<compile_context>
chip_gen: v7x
topology: tpu7x:2x2x1
jax: 0.10.0
libtpu: 0.0.40
codegen_flags: <defaults>
</compile_context>

<pallas_src>
import functools

import jax
import jax.numpy as jnp
from jax.experimental import pallas as pl
from jax.experimental.pallas import tpu as pltpu


def _round_up(x, m):
    return ((x + m - 1) // m) * m


# ----------------------------- host-side packing ------------------------------


def _pack_dense_kn2row(w_hwio, b, C, G, layer, pad_c, pad_g, w_dtype):
    """Pack a (3,3,cin,G) HWIO conv weight into the kn2row LHS (9*pad_g, Kc).

    Row-block t (size pad_g) holds the weights of tap t=(oy,ox).  Rows G..pad_g
    and the channel-pad columns are zero, pairing with the padded channel
    layout of the resident feature map (input C->pad_c, each layer G->pad_g).
    Bias -> (pad_g, 1) float32 with zero pad rows."""
    kc = pad_c + layer * pad_g
    w = jnp.asarray(w_hwio, jnp.float32)
    blocks = []
    for oy in (-1, 0, 1):
        for ox in (-1, 0, 1):
            wt = w[oy + 1, ox + 1].T                          # (G, cin)
            segs = [wt[:, :C]]
            if pad_c > C:
                segs.append(jnp.zeros((G, pad_c - C), jnp.float32))
            for j in range(layer):
                segs.append(wt[:, C + j * G:C + (j + 1) * G])
                if pad_g > G:
                    segs.append(jnp.zeros((G, pad_g - G), jnp.float32))
            blk = jnp.concatenate(segs, axis=-1)              # (G, kc)
            if pad_g > G:
                blk = jnp.concatenate(
                    [blk, jnp.zeros((pad_g - G, kc), jnp.float32)], axis=0)
            blocks.append(blk)
    wp = jnp.concatenate(blocks, axis=0).astype(w_dtype)      # (9*pad_g, kc)
    bp = jnp.zeros((pad_g, 1), jnp.float32).at[:G, 0].set(
        jnp.asarray(b, jnp.float32))
    return wp, bp


def _pack_lff(lff_w, lff_b, alpha, C, G, L, pad_c, pad_g, w_dtype):
    """1x1 conv weight (Ctot, C) -> (C, Cp) with alpha folded in; bias -> (C,1)."""
    lw = alpha * jnp.asarray(lff_w, jnp.float32).T            # (C, Ctot)
    segs = [lw[:, :C]]
    if pad_c > C:
        segs.append(jnp.zeros((C, pad_c - C), jnp.float32))
    for j in range(L):
        segs.append(lw[:, C + j * G:C + (j + 1) * G])
        if pad_g > G:
            segs.append(jnp.zeros((C, pad_g - G), jnp.float32))
    lwp = jnp.concatenate(segs, axis=-1).astype(w_dtype)      # (C, Cp)
    lbp = (alpha * jnp.asarray(lff_b, jnp.float32)).reshape(C, 1)
    return lwp, lbp


# ----------------------------- fused Pallas kernel ----------------------------


def _make_rdb_kernel(C, L, H, W, B, pad_c, pad_g, zh, compute_dtype):
    HW = H * W
    NBHW = B * HW
    taps = [(oy, ox) for oy in (-1, 0, 1) for ox in (-1, 0, 1)]

    def kernel(*refs):
        x_ref = refs[0]                          # (1, C, NBHW) block
        dense = refs[1:1 + 2 * L]                # (w_i, b_i) pairs
        lw_ref = refs[1 + 2 * L]                 # (C, Cp)
        lb_ref = refs[2 + 2 * L]                 # (C, 1)
        o_ref = refs[3 + 2 * L]                  # (1, C, NBHW) block
        feat = refs[4 + 2 * L]                   # VMEM (Cp, NBHW) resident features
        zbuf = refs[5 + 2 * L]                   # VMEM (9*pad_g, zh+NBHW+zh) f32

        # Hoisted per-lane coordinates: lane q = img*HW + y*W + x (per image),
        # so x = q % W and the within-image pixel index is q % HW.  Boundary
        # masks built from these are per-image, so they also kill any read
        # that would cross an image boundary or land in the zbuf halo.
        q = jax.lax.broadcasted_iota(jnp.int32, (pad_g, NBHW), 1)
        col = q % W
        pix = q % HW

        def tap_mask(oy, ox):
            m = None
            if oy == -1:
                m = pix >= W
            elif oy == 1:
                m = pix < HW - W
            if ox == -1:
                cm = col >= 1
                m = cm if m is None else jnp.logical_and(m, cm)
            elif ox == 1:
                cm = col <= W - 2
                m = cm if m is None else jnp.logical_and(m, cm)
            return m

        tap_masks = [tap_mask(oy, ox) for (oy, ox) in taps]

        # Residual input (f32) + aligned padded copy into the resident feature
        # map (pad rows written as zeros; no whole-scratch memset needed).
        x = x_ref[0].astype(jnp.float32)                       # (C, NBHW)
        xin = x.astype(compute_dtype)
        if pad_c > C:
            xin = jnp.concatenate(
                [xin, jnp.zeros((pad_c - C, NBHW), compute_dtype)], axis=0)
        feat[0:pad_c, :] = xin

        # Dense layers (kn2row): one (9*pad_g, Kc) x (Kc, NBHW) MXU matmul,
        # then 9 lane-shifted, masked (pad_g, NBHW) partials summed on the VPU.
        for i in range(L):
            w_ref, b_ref = dense[2 * i], dense[2 * i + 1]
            kc = pad_c + i * pad_g
            zbuf[:, zh:zh + NBHW] = jnp.dot(
                w_ref[...], feat[0:kc, :],
                preferred_element_type=jnp.float32)            # (9*pad_g, NBHW)
            acc = None
            for t, (oy, ox) in enumerate(taps):
                off = oy * W + ox
                zt = zbuf[t * pad_g:(t + 1) * pad_g,
                          zh + off:zh + off + NBHW]             # (pad_g, NBHW)
                if tap_masks[t] is not None:
                    zt = jnp.where(tap_masks[t], zt, 0.0)
                acc = zt if acc is None else acc + zt
            y = jnp.maximum(acc + b_ref[...], 0.0)              # (pad_g, NBHW)
            row = pad_c + i * pad_g
            feat[row:row + pad_g, :] = y.astype(compute_dtype)  # aligned tile store

        # Local feature fusion (1x1 conv, alpha pre-folded) + residual.
        cp = pad_c + L * pad_g
        lff = jnp.dot(lw_ref[...], feat[0:cp, :],
                      preferred_element_type=jnp.float32) + lb_ref[...]
        o_ref[...] = (x + lff)[None].astype(o_ref.dtype)

    return kernel


# ----------------------------- wrapper -----------------------------------------


@functools.partial(jax.jit, static_argnames=("b_blk", "compute_dtype"))
def rdb_forward(x_nchw, params, b_blk=None, compute_dtype=jnp.float32):
    """RDB forward, NCHW in / NCHW out (matches the PyTorch module).

    b_blk: images processed per grid step (lane-concatenated).  compute_dtype:
    matmul-operand dtype (jnp.bfloat16 for the v6e/v7x fast path); accumulation
    and elementwise math stay in f32 either way."""
    N, C, H, W = x_nchw.shape
    HW = H * W
    dense = params["dense"]
    L = len(dense)
    G = dense[0][0].shape[-1]
    pad_c = _round_up(C, 8)
    pad_g = _round_up(G, 8)
    cp = pad_c + L * pad_g
    zh = _round_up(W + 1, 128)          # conv-result lane halo (always >= W+1)
    alpha = jnp.asarray(params["alpha"], jnp.float32)
    c_itemsize = jnp.dtype(compute_dtype).itemsize

    # Pick images-per-grid-step: amortize per-step overhead and widen the
    # matmul N dim, but keep >= 2 grid steps (both v7x TCs busy) and keep the
    # resident feature map comfortably inside VMEM.
    if b_blk is None:
        b_blk = 1
        for b in range(N, 0, -1):
            if N % b:
                continue
            if N // b < min(2, N):
                continue
            if cp * b * HW * c_itemsize > 8 * 2**20:
                continue
            b_blk = b
            break
    if N % b_blk != 0:
        raise ValueError(f"b_blk={b_blk} must divide batch size {N}")
    NB = N // b_blk
    NBHW = b_blk * HW

    # Host-side packing (kn2row LHS per layer; alpha folded into the lff).
    xg = x_nchw.reshape(NB, b_blk, C, HW).transpose(0, 2, 1, 3).reshape(NB, C, NBHW)
    ops = [xg]
    in_specs = [pl.BlockSpec((1, C, NBHW), lambda n: (n, 0, 0))]
    w_bytes = 0
    for i, (w, b) in enumerate(dense):
        wp, bp = _pack_dense_kn2row(w, b, C, G, i, pad_c, pad_g, compute_dtype)
        ops += [wp, bp]
        in_specs += [pl.BlockSpec(wp.shape, lambda n: (0, 0)),
                     pl.BlockSpec(bp.shape, lambda n: (0, 0))]
        w_bytes += wp.size * c_itemsize + bp.size * 4
    lwp, lbp = _pack_lff(params["lff_w"], params["lff_b"], alpha,
                         C, G, L, pad_c, pad_g, compute_dtype)
    ops += [lwp, lbp]
    in_specs += [pl.BlockSpec(lwp.shape, lambda n: (0, 0)),
                 pl.BlockSpec(lbp.shape, lambda n: (0, 0))]
    w_bytes += lwp.size * c_itemsize + lbp.size * 4

    # Explicit VMEM budget (important on v7x's 64 MiB VMEM).
    x_itemsize = x_nchw.dtype.itemsize
    est = (cp * NBHW * c_itemsize                      # resident feature map
           + 9 * pad_g * (NBHW + 2 * zh) * 4           # per-layer conv result + halo
           + 4 * C * NBHW * x_itemsize                 # double-buffered in/out blocks
           + 2 * w_bytes)                              # packed weights/biases
    vmem_limit = int(min(100 * 2**20, max(16 * 2**20, 2 * est)))
    # TODO(synk): for large H*W (whole image no longer VMEM-resident) add a
    # spatial grid dimension with a W-row overlap halo instead of whole-image
    # residency.

    out = pl.pallas_call(
        _make_rdb_kernel(C, L, H, W, b_blk, pad_c, pad_g, zh, compute_dtype),
        out_shape=jax.ShapeDtypeStruct((NB, C, NBHW), x_nchw.dtype),
        grid=(NB,),
        in_specs=in_specs,
        out_specs=pl.BlockSpec((1, C, NBHW), lambda n: (n, 0, 0)),
        scratch_shapes=[
            pltpu.VMEM((cp, NBHW), compute_dtype),
            pltpu.VMEM((9 * pad_g, zh + NBHW + zh), jnp.float32),
        ],
        compiler_params=pltpu.CompilerParams(
            dimension_semantics=("parallel",),
            vmem_limit_bytes=vmem_limit),
    )(*ops)
    return (out.reshape(NB, C, b_blk, HW)
               .transpose(0, 2, 1, 3)
               .reshape(N, C, H, W))


# ----------------------------- parameters --------------------------------------


def init_rdb_params(key, in_channels, growth_rate, num_layers):
    """Synthetic parameters (conv weights stored HWIO; lff as (Ctot, Cin))."""
    params = {"dense": [], "alpha": jnp.float32(1.0)}
    for i in range(num_layers):
        cin = in_channels + growth_rate * i
        key, kw, kb = jax.random.split(key, 3)
        w = 0.1 * jax.random.normal(kw, (3, 3, cin, growth_rate), jnp.float32)
        b = 0.1 * jax.random.normal(kb, (growth_rate,), jnp.float32)
        params["dense"].append((w, b))
    ctot = in_channels + growth_rate * num_layers
    key, kw, kb = jax.random.split(key, 3)
    params["lff_w"] = 0.1 * jax.random.normal(kw, (ctot, in_channels), jnp.float32)
    params["lff_b"] = 0.1 * jax.random.normal(kb, (in_channels,), jnp.float32)
    return params


# ----------------------------- reference (pure JAX) -----------------------------


def _conv_ref(x_nhwc, w_hwio, b):
    y = jax.lax.conv_general_dilated(
        x_nhwc, w_hwio, window_strides=(1, 1), padding="SAME",
        dimension_numbers=("NHWC", "HWIO", "NHWC"))
    return y + b


def rdb_forward_ref(x_nchw, params):
    x = jnp.transpose(x_nchw, (0, 2, 3, 1))
    feat = x
    for (w, b) in params["dense"]:
        y = jnp.maximum(_conv_ref(feat, w, b), 0.0)
        feat = jnp.concatenate([feat, y], axis=-1)
    w11 = params["lff_w"][None, None]                 # (1,1,Ctot,Cin)
    lff = _conv_ref(feat, w11, params["lff_b"])
    out = x + params["alpha"] * lff
    return jnp.transpose(out, (0, 3, 1, 2))


# ----------------------------- main ---------------------------------------------

if __name__ == "__main__":
    key = jax.random.PRNGKey(0)
    k_in, k_par = jax.random.split(key)

    N, C, H, W = 2, 4, 16, 16
    growth_rate, num_layers = 4, 3

    x = jax.random.normal(k_in, (N, C, H, W), jnp.float32)
    params = init_rdb_params(k_par, C, growth_rate, num_layers)
    ref = jax.block_until_ready(rdb_forward_ref(x, params))

    # 1) Default f32 path (bit-faithful to the PyTorch module semantics).
    out = jax.block_until_ready(rdb_forward(x, params))
    assert out.shape == (N, C, H, W), out.shape
    assert jnp.max(jnp.abs(out - ref)) < 1e-3, float(jnp.max(jnp.abs(out - ref)))

    # 2) Batched grid steps (2 images per step, lane-concatenated).
    x4 = jax.random.normal(k_in, (4, C, H, W), jnp.float32)
    ref4 = jax.block_until_ready(rdb_forward_ref(x4, params))
    out4 = jax.block_until_ready(rdb_forward(x4, params, b_blk=2))
    assert jnp.max(jnp.abs(out4 - ref4)) < 1e-3, float(jnp.max(jnp.abs(out4 - ref4)))

    # 3) bf16 MXU-operand fast path (v6e/v7x), f32 accumulation.
    out_bf = jax.block_until_ready(
        rdb_forward(x, params, compute_dtype=jnp.bfloat16))
    assert jnp.max(jnp.abs(out_bf - ref)) < 1e-1, float(jnp.max(jnp.abs(out_bf - ref)))

    print("KERNEL_OK")
</pallas_src>

<mosaic_0001>
module attributes {stable_mosaic.version = 11 : i64} {
  func.func @kernel(%arg0: i32, %arg1: memref<1x4x256xf32, #tpu.memory_space<vmem>>, %arg2: memref<72x8xf32, #tpu.memory_space<vmem>>, %arg3: memref<8x1xf32, #tpu.memory_space<vmem>>, %arg4: memref<72x16xf32, #tpu.memory_space<vmem>>, %arg5: memref<8x1xf32, #tpu.memory_space<vmem>>, %arg6: memref<72x24xf32, #tpu.memory_space<vmem>>, %arg7: memref<8x1xf32, #tpu.memory_space<vmem>>, %arg8: memref<4x32xf32, #tpu.memory_space<vmem>>, %arg9: memref<4x1xf32, #tpu.memory_space<vmem>>, %arg10: memref<1x4x256xf32, #tpu.memory_space<vmem>>, %arg11: memref<32x256xf32, #tpu.memory_space<vmem>>, %arg12: memref<72x512xf32, #tpu.memory_space<vmem>>) attributes {dimension_semantics = [#tpu.dimension_semantics<parallel>], iteration_bounds = array<i64: 2>, scalar_prefetch = 0 : i64, scratch_operands = 2 : i64, tpu.core_type = #tpu.core_type<tc>, window_params = [{transform_indices = @transform_0, window_bounds = array<i64: 1, 4, 256>}, {pipeline_mode = #tpu.pipeline_mode<synchronous>, transform_indices = @transform_1, window_bounds = array<i64: 72, 8>}, {pipeline_mode = #tpu.pipeline_mode<synchronous>, transform_indices = @transform_2, window_bounds = array<i64: 8, 1>}, {pipeline_mode = #tpu.pipeline_mode<synchronous>, transform_indices = @transform_3, window_bounds = array<i64: 72, 16>}, {pipeline_mode = #tpu.pipeline_mode<synchronous>, transform_indices = @transform_4, window_bounds = array<i64: 8, 1>}, {pipeline_mode = #tpu.pipeline_mode<synchronous>, transform_indices = @transform_5, window_bounds = array<i64: 72, 24>}, {pipeline_mode = #tpu.pipeline_mode<synchronous>, transform_indices = @transform_6, window_bounds = array<i64: 8, 1>}, {pipeline_mode = #tpu.pipeline_mode<synchronous>, transform_indices = @transform_7, window_bounds = array<i64: 4, 32>}, {pipeline_mode = #tpu.pipeline_mode<synchronous>, transform_indices = @transform_8, window_bounds = array<i64: 4, 1>}, {transform_indices = @transform_9, window_bounds = array<i64: 1, 4, 256>}]} {
    %0 = tpu.iota {dimensions = array<i32: 1>} : vector<8x256xi32>
    %c16_i32 = arith.constant 16 : i32
    %c0_i32 = arith.constant 0 : i32
    %1 = arith.cmpi eq, %c16_i32, %c0_i32 : i32
    %c1_i32 = arith.constant 1 : i32
    %2 = arith.select %1, %c1_i32, %c16_i32 : i32
    %3 = vector.broadcast %2 : i32 to vector<8x256xi32>
    %4 = arith.remsi %0, %3 : vector<8x256xi32>
    %c0_i32_0 = arith.constant 0 : i32
    %5 = vector.broadcast %c0_i32_0 : i32 to vector<8x256xi32>
    %6 = arith.cmpi ne, %4, %5 : vector<8x256xi32>
    %c0_i32_1 = arith.constant 0 : i32
    %7 = vector.broadcast %c0_i32_1 : i32 to vector<8x256xi32>
    %8 = arith.cmpi slt, %4, %7 : vector<8x256xi32>
    %c0_i32_2 = arith.constant 0 : i32
    %9 = arith.cmpi slt, %2, %c0_i32_2 : i32
    %10 = vector.broadcast %9 : i1 to vector<8x256xi1>
    %11 = vector.broadcast %10 : vector<8x256xi1> to vector<8x256xi1>
    %12 = arith.xori %8, %11 : vector<8x256xi1>
    %13 = arith.andi %12, %6 : vector<8x256xi1>
    %14 = vector.broadcast %2 : i32 to vector<8x256xi32>
    %15 = arith.addi %4, %14 : vector<8x256xi32>
    %16 = arith.select %13, %15, %4 : vector<8x256xi1>, vector<8x256xi32>
    %c256_i32 = arith.constant 256 : i32
    %c0_i32_3 = arith.constant 0 : i32
    %17 = arith.cmpi eq, %c256_i32, %c0_i32_3 : i32
    %c1_i32_4 = arith.constant 1 : i32
    %18 = arith.select %17, %c1_i32_4, %c256_i32 : i32
    %19 = vector.broadcast %18 : i32 to vector<8x256xi32>
    %20 = arith.remsi %0, %19 : vector<8x256xi32>
    %c0_i32_5 = arith.constant 0 : i32
    %21 = vector.broadcast %c0_i32_5 : i32 to vector<8x256xi32>
    %22 = arith.cmpi ne, %20, %21 : vector<8x256xi32>
    %c0_i32_6 = arith.constant 0 : i32
    %23 = vector.broadcast %c0_i32_6 : i32 to vector<8x256xi32>
    %24 = arith.cmpi slt, %20, %23 : vector<8x256xi32>
    %c0_i32_7 = arith.constant 0 : i32
    %25 = arith.cmpi slt, %18, %c0_i32_7 : i32
    %26 = vector.broadcast %25 : i1 to vector<8x256xi1>
    %27 = vector.broadcast %26 : vector<8x256xi1> to vector<8x256xi1>
    %28 = arith.xori %24, %27 : vector<8x256xi1>
    %29 = arith.andi %28, %22 : vector<8x256xi1>
    %30 = vector.broadcast %18 : i32 to vector<8x256xi32>
    %31 = arith.addi %20, %30 : vector<8x256xi32>
    %32 = arith.select %29, %31, %20 : vector<8x256xi1>, vector<8x256xi32>
    %c16_i32_8 = arith.constant 16 : i32
    %33 = vector.broadcast %c16_i32_8 : i32 to vector<8x256xi32>
    %34 = arith.cmpi sge, %32, %33 : vector<8x256xi32>
    %c1_i32_9 = arith.constant 1 : i32
    %35 = vector.broadcast %c1_i32_9 : i32 to vector<8x256xi32>
    %36 = arith.cmpi sge, %16, %35 : vector<8x256xi32>
    %37 = arith.andi %34, %36 : vector<8x256xi1>
    %c16_i32_10 = arith.constant 16 : i32
    %38 = vector.broadcast %c16_i32_10 : i32 to vector<8x256xi32>
    %39 = arith.cmpi sge, %32, %38 : vector<8x256xi32>
    %c16_i32_11 = arith.constant 16 : i32
    %40 = vector.broadcast %c16_i32_11 : i32 to vector<8x256xi32>
    %41 = arith.cmpi sge, %32, %40 : vector<8x256xi32>
    %c14_i32 = arith.constant 14 : i32
    %42 = vector.broadcast %c14_i32 : i32 to vector<8x256xi32>
    %43 = arith.cmpi sle, %16, %42 : vector<8x256xi32>
    %44 = arith.andi %41, %43 : vector<8x256xi1>
    %c1_i32_12 = arith.constant 1 : i32
    %45 = vector.broadcast %c1_i32_12 : i32 to vector<8x256xi32>
    %46 = arith.cmpi sge, %16, %45 : vector<8x256xi32>
    %c14_i32_13 = arith.constant 14 : i32
    %47 = vector.broadcast %c14_i32_13 : i32 to vector<8x256xi32>
    %48 = arith.cmpi sle, %16, %47 : vector<8x256xi32>
    %c240_i32 = arith.constant 240 : i32
    %49 = vector.broadcast %c240_i32 : i32 to vector<8x256xi32>
    %50 = arith.cmpi slt, %32, %49 : vector<8x256xi32>
    %c1_i32_14 = arith.constant 1 : i32
    %51 = vector.broadcast %c1_i32_14 : i32 to vector<8x256xi32>
    %52 = arith.cmpi sge, %16, %51 : vector<8x256xi32>
    %53 = arith.andi %50, %52 : vector<8x256xi1>
    %c240_i32_15 = arith.constant 240 : i32
    %54 = vector.broadcast %c240_i32_15 : i32 to vector<8x256xi32>
    %55 = arith.cmpi slt, %32, %54 : vector<8x256xi32>
    %c240_i32_16 = arith.constant 240 : i32
    %56 = vector.broadcast %c240_i32_16 : i32 to vector<8x256xi32>
    %57 = arith.cmpi slt, %32, %56 : vector<8x256xi32>
    %c14_i32_17 = arith.constant 14 : i32
    %58 = vector.broadcast %c14_i32_17 : i32 to vector<8x256xi32>
    %59 = arith.cmpi sle, %16, %58 : vector<8x256xi32>
    %60 = arith.andi %57, %59 : vector<8x256xi1>
    %c0 = arith.constant 0 : index
    %c0_18 = arith.constant 0 : index
    %c0_19 = arith.constant 0 : index
    %61 = vector.load %arg1[%c0, %c0_18, %c0_19] : memref<1x4x256xf32, #tpu.memory_space<vmem>>, vector<1x4x256xf32>
    %62 = vector.shape_cast %61 : vector<1x4x256xf32> to vector<4x256xf32>
    %cst = arith.constant 0.000000e+00 : f32
    %63 = vector.broadcast %cst : f32 to vector<4x256xf32>
    %64 = tpu.concatenate %62, %63 in 0 : vector<4x256xf32>, vector<4x256xf32> -> vector<8x256xf32>
    %c0_20 = arith.constant 0 : index
    %c0_21 = arith.constant 0 : index
    %65 = vector.load %arg11[%c0_20, %c0_21] : memref<32x256xf32, #tpu.memory_space<vmem>>, vector<8x256xf32>
    tpu.vector_store %arg11[%c0_20, %c0_21], %64 {strides = array<i32>} : memref<32x256xf32, #tpu.memory_space<vmem>>, vector<8x256xf32>,
    %c0_22 = arith.constant 0 : index
    %c0_23 = arith.constant 0 : index
    %66 = vector.load %arg2[%c0_22, %c0_23] : memref<72x8xf32, #tpu.memory_space<vmem>>, vector<72x8xf32>
    %c0_24 = arith.constant 0 : index
    %c0_25 = arith.constant 0 : index
    %67 = vector.load %arg11[%c0_24, %c0_25] : memref<32x256xf32, #tpu.memory_space<vmem>>, vector<8x256xf32>
    %cst_26 = arith.constant dense<0.000000e+00> : vector<72x256xf32>
    %68 = tpu.matmul %66, %67, %cst_26 {dimension_numbers = #tpu.dot_dimension_numbers<[1], [0], [0], [1], [0, 0, 1, 1], [], []>} : vector<72x8xf32>, vector<8x256xf32>, vector<72x256xf32> -> vector<72x256xf32>
    %c0_27 = arith.constant 0 : index
    %c128 = arith.constant 128 : index
    %69 = vector.load %arg12[%c0_27, %c128] : memref<72x512xf32, #tpu.memory_space<vmem>>, vector<72x256xf32>
    tpu.vector_store %arg12[%c0_27, %c128], %68 {strides = array<i32>} : memref<72x512xf32, #tpu.memory_space<vmem>>, vector<72x256xf32>,
    %c0_28 = arith.constant 0 : index
    %c111 = arith.constant 111 : index
    %70 = vector.load %arg12[%c0_28, %c111] : memref<72x512xf32, #tpu.memory_space<vmem>>, vector<8x256xf32>
    %cst_29 = arith.constant 0.000000e+00 : f32
    %71 = vector.broadcast %cst_29 : f32 to vector<8x256xf32>
    %72 = arith.select %37, %70, %71 : vector<8x256xi1>, vector<8x256xf32>
    %c8 = arith.constant 8 : index
    %c112 = arith.constant 112 : index
    %73 = vector.load %arg12[%c8, %c112] : memref<72x512xf32, #tpu.memory_space<vmem>>, vector<8x256xf32>
    %cst_30 = arith.constant 0.000000e+00 : f32
    %74 = vector.broadcast %cst_30 : f32 to vector<8x256xf32>
    %75 = arith.select %39, %73, %74 : vector<8x256xi1>, vector<8x256xf32>
    %76 = arith.addf %72, %75 : vector<8x256xf32>
    %c16 = arith.constant 16 : index
    %c113 = arith.constant 113 : index
    %77 = vector.load %arg12[%c16, %c113] : memref<72x512xf32, #tpu.memory_space<vmem>>, vector<8x256xf32>
    %cst_31 = arith.constant 0.000000e+00 : f32
    %78 = vector.broadcast %cst_31 : f32 to vector<8x256xf32>
    %79 = arith.select %44, %77, %78 : vector<8x256xi1>, vector<8x256xf32>
    %80 = arith.addf %76, %79 : vector<8x256xf32>
    %c24 = arith.constant 24 : index
    %c127 = arith.constant 127 : index
    %81 = vector.load %arg12[%c24, %c127] : memref<72x512xf32, #tpu.memory_space<vmem>>, vector<8x256xf32>
    %cst_32 = arith.constant 0.000000e+00 : f32
    %82 = vector.broadcast %cst_32 : f32 to vector<8x256xf32>
    %83 = arith.select %46, %81, %82 : vector<8x256xi1>, vector<8x256xf32>
    %84 = arith.addf %80, %83 : vector<8x256xf32>
    %c32 = arith.constant 32 : index
    %c128_33 = arith.constant 128 : index
    %85 = vector.load %arg12[%c32, %c128_33] : memref<72x512xf32, #tpu.memory_space<vmem>>, vector<8x256xf32>
    %86 = arith.addf %84, %85 : vector<8x256xf32>
    %c40 = arith.constant 40 : index
    %c129 = arith.constant 129 : index
    %87 = vector.load %arg12[%c40, %c129] : memref<72x512xf32, #tpu.memory_space<vmem>>, vector<8x256xf32>
    %cst_34 = arith.constant 0.000000e+00 : f32
    %88 = vector.broadcast %cst_34 : f32 to vector<8x256xf32>
    %89 = arith.select %48, %87, %88 : vector<8x256xi1>, vector<8x256xf32>
    %90 = arith.addf %86, %89 : vector<8x256xf32>
    %c48 = arith.constant 48 : index
    %c143 = arith.constant 143 : index
    %91 = vector.load %arg12[%c48, %c143] : memref<72x512xf32, #tpu.memory_space<vmem>>, vector<8x256xf32>
    %cst_35 = arith.constant 0.000000e+00 : f32
    %92 = vector.broadcast %cst_35 : f32 to vector<8x256xf32>
    %93 = arith.select %53, %91, %92 : vector<8x256xi1>, vector<8x256xf32>
    %94 = arith.addf %90, %93 : vector<8x256xf32>
    %c56 = arith.constant 56 : index
    %c144 = arith.constant 144 : index
    %95 = vector.load %arg12[%c56, %c144] : memref<72x512xf32, #tpu.memory_space<vmem>>, vector<8x256xf32>
    %cst_36 = arith.constant 0.000000e+00 : f32
    %96 = vector.broadcast %cst_36 : f32 to vector<8x256xf32>
    %97 = arith.select %55, %95, %96 : vector<8x256xi1>, vector<8x256xf32>
    %98 = arith.addf %94, %97 : vector<8x256xf32>
    %c64 = arith.constant 64 : index
    %c145 = arith.constant 145 : index
    %99 = vector.load %arg12[%c64, %c145] : memref<72x512xf32, #tpu.memory_space<vmem>>, vector<8x256xf32>
    %cst_37 = arith.constant 0.000000e+00 : f32
    %100 = vector.broadcast %cst_37 : f32 to vector<8x256xf32>
    %101 = arith.select %60, %99, %100 : vector<8x256xi1>, vector<8x256xf32>
    %102 = arith.addf %98, %101 : vector<8x256xf32>
    %c0_38 = arith.constant 0 : index
    %c0_39 = arith.constant 0 : index
    %103 = vector.load %arg3[%c0_38, %c0_39] : memref<8x1xf32, #tpu.memory_space<vmem>>, vector<8x1xf32>
    %104 = vector.broadcast %103 : vector<8x1xf32> to vector<8x256xf32>
    %105 = arith.addf %102, %104 : vector<8x256xf32>
    %cst_40 = arith.constant 0.000000e+00 : f32
    %106 = vector.broadcast %cst_40 : f32 to vector<8x256xf32>
    %107 = arith.maximumf %105, %106 : vector<8x256xf32>
    %c8_41 = arith.constant 8 : index
    %c0_42 = arith.constant 0 : index
    %108 = vector.load %arg11[%c8_41, %c0_42] : memref<32x256xf32, #tpu.memory_space<vmem>>, vector<8x256xf32>
    tpu.vector_store %arg11[%c8_41, %c0_42], %107 {strides = array<i32>} : memref<32x256xf32, #tpu.memory_space<vmem>>, vector<8x256xf32>,
    %c0_43 = arith.constant 0 : index
    %c0_44 = arith.constant 0 : index
    %109 = vector.load %arg4[%c0_43, %c0_44] : memref<72x16xf32, #tpu.memory_space<vmem>>, vector<72x16xf32>
    %c0_45 = arith.constant 0 : index
    %c0_46 = arith.constant 0 : index
    %110 = vector.load %arg11[%c0_45, %c0_46] : memref<32x256xf32, #tpu.memory_space<vmem>>, vector<16x256xf32>
    %cst_47 = arith.constant dense<0.000000e+00> : vector<72x256xf32>
    %111 = tpu.matmul %109, %110, %cst_47 {dimension_numbers = #tpu.dot_dimension_numbers<[1], [0], [0], [1], [0, 0, 1, 1], [], []>} : vector<72x16xf32>, vector<16x256xf32>, vector<72x256xf32> -> vector<72x256xf32>
    %c0_48 = arith.constant 0 : index
    %c128_49 = arith.constant 128 : index
    %112 = vector.load %arg12[%c0_48, %c128_49] : memref<72x512xf32, #tpu.memory_space<vmem>>, vector<72x256xf32>
    tpu.vector_store %arg12[%c0_48, %c128_49], %111 {strides = array<i32>} : memref<72x512xf32, #tpu.memory_space<vmem>>, vector<72x256xf32>,
    %c0_50 = arith.constant 0 : index
    %c111_51 = arith.constant 111 : index
    %113 = vector.load %arg12[%c0_50, %c111_51] : memref<72x512xf32, #tpu.memory_space<vmem>>, vector<8x256xf32>
    %cst_52 = arith.constant 0.000000e+00 : f32
    %114 = vector.broadcast %cst_52 : f32 to vector<8x256xf32>
    %115 = arith.select %37, %113, %114 : vector<8x256xi1>, vector<8x256xf32>
    %c8_53 = arith.constant 8 : index
    %c112_54 = arith.constant 112 : index
    %116 = vector.load %arg12[%c8_53, %c112_54] : memref<72x512xf32, #tpu.memory_space<vmem>>, vector<8x256xf32>
    %cst_55 = arith.constant 0.000000e+00 : f32
    %117 = vector.broadcast %cst_55 : f32 to vector<8x256xf32>
    %118 = arith.select %39, %116, %117 : vector<8x256xi1>, vector<8x256xf32>
    %119 = arith.addf %115, %118 : vector<8x256xf32>
    %c16_56 = arith.constant 16 : index
    %c113_57 = arith.constant 113 : index
    %120 = vector.load %arg12[%c16_56, %c113_57] : memref<72x512xf32, #tpu.memory_space<vmem>>, vector<8x256xf32>
    %cst_58 = arith.constant 0.000000e+00 : f32
    %121 = vector.broadcast %cst_58 : f32 to vector<8x256xf32>
    %122 = arith.select %44, %120, %121 : vector<8x256xi1>, vector<8x256xf32>
    %123 = arith.addf %119, %122 : vector<8x256xf32>
    %c24_59 = arith.constant 24 : index
    %c127_60 = arith.constant 127 : index
    %124 = vector.load %arg12[%c24_59, %c127_60] : memref<72x512xf32, #tpu.memory_space<vmem>>, vector<8x256xf32>
    %cst_61 = arith.constant 0.000000e+00 : f32
    %125 = vector.broadcast %cst_61 : f32 to vector<8x256xf32>
    %126 = arith.select %46, %124, %125 : vector<8x256xi1>, vector<8x256xf32>
    %127 = arith.addf %123, %126 : vector<8x256xf32>
    %c32_62 = arith.constant 32 : index
    %c128_63 = arith.constant 128 : index
    %128 = vector.load %arg12[%c32_62, %c128_63] : memref<72x512xf32, #tpu.memory_space<vmem>>, vector<8x256xf32>
    %129 = arith.addf %127, %128 : vector<8x256xf32>
    %c40_64 = arith.constant 40 : index
    %c129_65 = arith.constant 129 : index
    %130 = vector.load %arg12[%c40_64, %c129_65] : memref<72x512xf32, #tpu.memory_space<vmem>>, vector<8x256xf32>
    %cst_66 = arith.constant 0.000000e+00 : f32
    %131 = vector.broadcast %cst_66 : f32 to vector<8x256xf32>
    %132 = arith.select %48, %130, %131 : vector<8x256xi1>, vector<8x256xf32>
    %133 = arith.addf %129, %132 : vector<8x256xf32>
    %c48_67 = arith.constant 48 : index
    %c143_68 = arith.constant 143 : index
    %134 = vector.load %arg12[%c48_67, %c143_68] : memref<72x512xf32, #tpu.memory_space<vmem>>, vector<8x256xf32>
    %cst_69 = arith.constant 0.000000e+00 : f32
    %135 = vector.broadcast %cst_69 : f32 to vector<8x256xf32>
    %136 = arith.select %53, %134, %135 : vector<8x256xi1>, vector<8x256xf32>
    %137 = arith.addf %133, %136 : vector<8x256xf32>
    %c56_70 = arith.constant 56 : index
    %c144_71 = arith.constant 144 : index
    %138 = vector.load %arg12[%c56_70, %c144_71] : memref<72x512xf32, #tpu.memory_space<vmem>>, vector<8x256xf32>
    %cst_72 = arith.constant 0.000000e+00 : f32
    %139 = vector.broadcast %cst_72 : f32 to vector<8x256xf32>
    %140 = arith.select %55, %138, %139 : vector<8x256xi1>, vector<8x256xf32>
    %141 = arith.addf %137, %140 : vector<8x256xf32>
    %c64_73 = arith.constant 64 : index
    %c145_74 = arith.constant 145 : index
    %142 = vector.load %arg12[%c64_73, %c145_74] : memref<72x512xf32, #tpu.memory_space<vmem>>, vector<8x256xf32>
    %cst_75 = arith.constant 0.000000e+00 : f32
    %143 = vector.broadcast %cst_75 : f32 to vector<8x256xf32>
    %144 = arith.select %60, %142, %143 : vector<8x256xi1>, vector<8x256xf32>
    %145 = arith.addf %141, %144 : vector<8x256xf32>
    %c0_76 = arith.constant 0 : index
    %c0_77 = arith.constant 0 : index
    %146 = vector.load %arg5[%c0_76, %c0_77] : memref<8x1xf32, #tpu.memory_space<vmem>>, vector<8x1xf32>
    %147 = vector.broadcast %146 : vector<8x1xf32> to vector<8x256xf32>
    %148 = arith.addf %145, %147 : vector<8x256xf32>
    %cst_78 = arith.constant 0.000000e+00 : f32
    %149 = vector.broadcast %cst_78 : f32 to vector<8x256xf32>
    %150 = arith.maximumf %148, %149 : vector<8x256xf32>
    %c16_79 = arith.constant 16 : index
    %c0_80 = arith.constant 0 : index
    %151 = vector.load %arg11[%c16_79, %c0_80] : memref<32x256xf32, #tpu.memory_space<vmem>>, vector<8x256xf32>
    tpu.vector_store %arg11[%c16_79, %c0_80], %150 {strides = array<i32>} : memref<32x256xf32, #tpu.memory_space<vmem>>, vector<8x256xf32>,
    %c0_81 = arith.constant 0 : index
    %c0_82 = arith.constant 0 : index
    %152 = vector.load %arg6[%c0_81, %c0_82] : memref<72x24xf32, #tpu.memory_space<vmem>>, vector<72x24xf32>
    %c0_83 = arith.constant 0 : index
    %c0_84 = arith.constant 0 : index
    %153 = vector.load %arg11[%c0_83, %c0_84] : memref<32x256xf32, #tpu.memory_space<vmem>>, vector<24x256xf32>
    %cst_85 = arith.constant dense<0.000000e+00> : vector<72x256xf32>
    %154 = tpu.matmul %152, %153, %cst_85 {dimension_numbers = #tpu.dot_dimension_numbers<[1], [0], [0], [1], [0, 0, 1, 1], [], []>} : vector<72x24xf32>, vector<24x256xf32>, vector<72x256xf32> -> vector<72x256xf32>
    %c0_86 = arith.constant 0 : index
    %c128_87 = arith.constant 128 : index
    %155 = vector.load %arg12[%c0_86, %c128_87] : memref<72x512xf32, #tpu.memory_space<vmem>>, vector<72x256xf32>
    tpu.vector_store %arg12[%c0_86, %c128_87], %154 {strides = array<i32>} : memref<72x512xf32, #tpu.memory_space<vmem>>, vector<72x256xf32>,
    %c0_88 = arith.constant 0 : index
    %c111_89 = arith.constant 111 : index
    %156 = vector.load %arg12[%c0_88, %c111_89] : memref<72x512xf32, #tpu.memory_space<vmem>>, vector<8x256xf32>
    %cst_90 = arith.constant 0.000000e+00 : f32
    %157 = vector.broadcast %cst_90 : f32 to vector<8x256xf32>
    %158 = arith.select %37, %156, %157 : vector<8x256xi1>, vector<8x256xf32>
    %c8_91 = arith.constant 8 : index
    %c112_92 = arith.constant 112 : index
    %159 = vector.load %arg12[%c8_91, %c112_92] : memref<72x512xf32, #tpu.memory_space<vmem>>, vector<8x256xf32>
    %cst_93 = arith.constant 0.000000e+00 : f32
    %160 = vector.broadcast %cst_93 : f32 to vector<8x256xf32>
    %161 = arith.select %39, %159, %160 : vector<8x256xi1>, vector<8x256xf32>
    %162 = arith.addf %158, %161 : vector<8x256xf32>
    %c16_94 = arith.constant 16 : index
    %c113_95 = arith.constant 113 : index
    %163 = vector.load %arg12[%c16_94, %c113_95] : memref<72x512xf32, #tpu.memory_space<vmem>>, vector<8x256xf32>
    %cst_96 = arith.constant 0.000000e+00 : f32
    %164 = vector.broadcast %cst_96 : f32 to vector<8x256xf32>
    %165 = arith.select %44, %163, %164 : vector<8x256xi1>, vector<8x256xf32>
    %166 = arith.addf %162, %165 : vector<8x256xf32>
    %c24_97 = arith.constant 24 : index
    %c127_98 = arith.constant 127 : index
    %167 = vector.load %arg12[%c24_97, %c127_98] : memref<72x512xf32, #tpu.memory_space<vmem>>, vector<8x256xf32>
    %cst_99 = arith.constant 0.000000e+00 : f32
    %168 = vector.broadcast %cst_99 : f32 to vector<8x256xf32>
    %169 = arith.select %46, %167, %168 : vector<8x256xi1>, vector<8x256xf32>
    %170 = arith.addf %166, %169 : vector<8x256xf32>
    %c32_100 = arith.constant 32 : index
    %c128_101 = arith.constant 128 : index
    %171 = vector.load %arg12[%c32_100, %c128_101] : memref<72x512xf32, #tpu.memory_space<vmem>>, vector<8x256xf32>
    %172 = arith.addf %170, %171 : vector<8x256xf32>
    %c40_102 = arith.constant 40 : index
    %c129_103 = arith.constant 129 : index
    %173 = vector.load %arg12[%c40_102, %c129_103] : memref<72x512xf32, #tpu.memory_space<vmem>>, vector<8x256xf32>
    %cst_104 = arith.constant 0.000000e+00 : f32
    %174 = vector.broadcast %cst_104 : f32 to vector<8x256xf32>
    %175 = arith.select %48, %173, %174 : vector<8x256xi1>, vector<8x256xf32>
    %176 = arith.addf %172, %175 : vector<8x256xf32>
    %c48_105 = arith.constant 48 : index
    %c143_106 = arith.constant 143 : index
    %177 = vector.load %arg12[%c48_105, %c143_106] : memref<72x512xf32, #tpu.memory_space<vmem>>, vector<8x256xf32>
    %cst_107 = arith.constant 0.000000e+00 : f32
    %178 = vector.broadcast %cst_107 : f32 to vector<8x256xf32>
    %179 = arith.select %53, %177, %178 : vector<8x256xi1>, vector<8x256xf32>
    %180 = arith.addf %176, %179 : vector<8x256xf32>
    %c56_108 = arith.constant 56 : index
    %c144_109 = arith.constant 144 : index
    %181 = vector.load %arg12[%c56_108, %c144_109] : memref<72x512xf32, #tpu.memory_space<vmem>>, vector<8x256xf32>
    %cst_110 = arith.constant 0.000000e+00 : f32
    %182 = vector.broadcast %cst_110 : f32 to vector<8x256xf32>
    %183 = arith.select %55, %181, %182 : vector<8x256xi1>, vector<8x256xf32>
    %184 = arith.addf %180, %183 : vector<8x256xf32>
    %c64_111 = arith.constant 64 : index
    %c145_112 = arith.constant 145 : index
    %185 = vector.load %arg12[%c64_111, %c145_112] : memref<72x512xf32, #tpu.memory_space<vmem>>, vector<8x256xf32>
    %cst_113 = arith.constant 0.000000e+00 : f32
    %186 = vector.broadcast %cst_113 : f32 to vector<8x256xf32>
    %187 = arith.select %60, %185, %186 : vector<8x256xi1>, vector<8x256xf32>
    %188 = arith.addf %184, %187 : vector<8x256xf32>
    %c0_114 = arith.constant 0 : index
    %c0_115 = arith.constant 0 : index
    %189 = vector.load %arg7[%c0_114, %c0_115] : memref<8x1xf32, #tpu.memory_space<vmem>>, vector<8x1xf32>
    %190 = vector.broadcast %189 : vector<8x1xf32> to vector<8x256xf32>
    %191 = arith.addf %188, %190 : vector<8x256xf32>
    %cst_116 = arith.constant 0.000000e+00 : f32
    %192 = vector.broadcast %cst_116 : f32 to vector<8x256xf32>
    %193 = arith.maximumf %191, %192 : vector<8x256xf32>
    %c24_117 = arith.constant 24 : index
    %c0_118 = arith.constant 0 : index
    %194 = vector.load %arg11[%c24_117, %c0_118] : memref<32x256xf32, #tpu.memory_space<vmem>>, vector<8x256xf32>
    tpu.vector_store %arg11[%c24_117, %c0_118], %193 {strides = array<i32>} : memref<32x256xf32, #tpu.memory_space<vmem>>, vector<8x256xf32>,
    %c0_119 = arith.constant 0 : index
    %c0_120 = arith.constant 0 : index
    %195 = vector.load %arg8[%c0_119, %c0_120] : memref<4x32xf32, #tpu.memory_space<vmem>>, vector<4x32xf32>
    %c0_121 = arith.constant 0 : index
    %c0_122 = arith.constant 0 : index
    %196 = vector.load %arg11[%c0_121, %c0_122] : memref<32x256xf32, #tpu.memory_space<vmem>>, vector<32x256xf32>
    %cst_123 = arith.constant dense<0.000000e+00> : vector<4x256xf32>
    %197 = tpu.matmul %195, %196, %cst_123 {dimension_numbers = #tpu.dot_dimension_numbers<[1], [0], [0], [1], [0, 0, 1, 1], [], []>} : vector<4x32xf32>, vector<32x256xf32>, vector<4x256xf32> -> vector<4x256xf32>
    %c0_124 = arith.constant 0 : index
    %c0_125 = arith.constant 0 : index
    %198 = vector.load %arg9[%c0_124, %c0_125] : memref<4x1xf32, #tpu.memory_space<vmem>>, vector<4x1xf32>
    %199 = vector.broadcast %198 : vector<4x1xf32> to vector<4x256xf32>
    %200 = arith.addf %197, %199 : vector<4x256xf32>
    %201 = arith.addf %62, %200 : vector<4x256xf32>
    %202 = vector.shape_cast %201 : vector<4x256xf32> to vector<1x4x256xf32>
    %c0_126 = arith.constant 0 : index
    %c0_127 = arith.constant 0 : index
    %c0_128 = arith.constant 0 : index
    %203 = vector.load %arg10[%c0_126, %c0_127, %c0_128] : memref<1x4x256xf32, #tpu.memory_space<vmem>>, vector<1x4x256xf32>
    tpu.vector_store %arg10[%c0_126, %c0_127, %c0_128], %202 {strides = array<i32>} : memref<1x4x256xf32, #tpu.memory_space<vmem>>, vector<1x4x256xf32>,
    return
  }
  func.func @transform_0(%arg0: i32) -> (i32, i32, i32) {
    %c0_i32 = arith.constant 0 : i32
    %c0_i32_0 = arith.constant 0 : i32
    %c0_i32_1 = arith.constant 0 : i32
    return %arg0, %c0_i32, %c0_i32_0 : i32, i32, i32
  }
  func.func @transform_1(%arg0: i32) -> (i32, i32) {
    %c0_i32 = arith.constant 0 : i32
    %c0_i32_0 = arith.constant 0 : i32
    %c0_i32_1 = arith.constant 0 : i32
    return %c0_i32, %c0_i32_0 : i32, i32
  }
  func.func @transform_2(%arg0: i32) -> (i32, i32) {
    %c0_i32 = arith.constant 0 : i32
    %c0_i32_0 = arith.constant 0 : i32
    %c0_i32_1 = arith.constant 0 : i32
    return %c0_i32, %c0_i32_0 : i32, i32
  }
  func.func @transform_3(%arg0: i32) -> (i32, i32) {
    %c0_i32 = arith.constant 0 : i32
    %c0_i32_0 = arith.constant 0 : i32
    %c0_i32_1 = arith.constant 0 : i32
    return %c0_i32, %c0_i32_0 : i32, i32
  }
  func.func @transform_4(%arg0: i32) -> (i32, i32) {
    %c0_i32 = arith.constant 0 : i32
    %c0_i32_0 = arith.constant 0 : i32
    %c0_i32_1 = arith.constant 0 : i32
    return %c0_i32, %c0_i32_0 : i32, i32
  }
  func.func @transform_5(%arg0: i32) -> (i32, i32) {
    %c0_i32 = arith.constant 0 : i32
    %c0_i32_0 = arith.constant 0 : i32
    %c0_i32_1 = arith.constant 0 : i32
    return %c0_i32, %c0_i32_0 : i32, i32
  }
  func.func @transform_6(%arg0: i32) -> (i32, i32) {
    %c0_i32 = arith.constant 0 : i32
    %c0_i32_0 = arith.constant 0 : i32
    %c0_i32_1 = arith.constant 0 : i32
    return %c0_i32, %c0_i32_0 : i32, i32
  }
  func.func @transform_7(%arg0: i32) -> (i32, i32) {
    %c0_i32 = arith.constant 0 : i32
    %c0_i32_0 = arith.constant 0 : i32
    %c0_i32_1 = arith.constant 0 : i32
    return %c0_i32, %c0_i32_0 : i32, i32
  }
  func.func @transform_8(%arg0: i32) -> (i32, i32) {
    %c0_i32 = arith.constant 0 : i32
    %c0_i32_0 = arith.constant 0 : i32
    %c0_i32_1 = arith.constant 0 : i32
    return %c0_i32, %c0_i32_0 : i32, i32
  }
  func.func @transform_9(%arg0: i32) -> (i32, i32, i32) {
    %c0_i32 = arith.constant 0 : i32
    %c0_i32_0 = arith.constant 0 : i32
    %c0_i32_1 = arith.constant 0 : i32
    return %arg0, %c0_i32, %c0_i32_0 : i32, i32, i32
  }
}

</mosaic_0001>

<bundles_post_ra>
// kernel: rdb_forward.1
= control target key start
LH: loop header
LB: loop body
LE: loop exit
PB: predicated region body
PF: predicated region fallthrough
CT: control target
= control target key end

     0   :  { %s1788_s30 = smov 0   ;;  %s2334_s0 = inlined_call_operand.vmem [shape: f32[2,4,256], index: 0, kind: input, shape index: {}]   ;;  %s2335_s1 = inlined_call_operand.vmem [shape: f32[72,8], index: 1, kind: input, shape index: {}]   ;;  %s2336_s2 = inlined_call_operand.vmem [shape: f32[8,1], index: 2, kind: input, shape index: {}]   ;;  %s2337_s3 = inlined_call_operand.vmem [shape: f32[72,16], index: 3, kind: input, shape index: {}]   ;;  %s2338_s4 = inlined_call_operand.vmem [shape: f32[8,1], index: 4, kind: input, shape index: {}]   ;;  %s2339_s5 = inlined_call_operand.vmem [shape: f32[72,24], index: 5, kind: input, shape index: {}]   ;;  %s2340_s6 = inlined_call_operand.vmem [shape: f32[8,1], index: 6, kind: input, shape index: {}]   ;;  %s2341_s7 = inlined_call_operand.vmem [shape: f32[4,32], index: 7, kind: input, shape index: {}]   ;;  %s2342_s8 = inlined_call_operand.vmem [shape: f32[4,1], index: 8, kind: input, shape index: {}]   ;;  %s2343_s9 = inlined_call_operand.vmem [shape: f32[2,4,256], index: 9, kind: output, shape index: {}]  }
   0x1 LB: > { %s1623_s10 = sadd.s32 4294967295, %s1725_s30   ;;  %p1627_p0 = scmp.ge.s32.totalorder %s1725_s30, 1  ;;  %s1725_s30 = sphi %s1788_s30, %s19_s30  }
   0x2   : > { %p287_p1 = scmp.lt.s32.totalorder %s1725_s30, 3 }
   0x4   : > { %p288_p2 = pnand %p1627_p0, %p287_p1 }
   0x5   : > { %p323_p3 = scmp.lt.s32.totalorder (!%p288_p2), %s1623_s10, 1  ;;  %v1727_v0 = vmov (!%p288_p2), 0.0   ;;  %v1800_v1 = vld [vmem:[#allocation3] sm:$0xff] (!%p288_p2)  ;;  %s1728_s12 = smov (!%p288_p2), 17   ;;  %vm404_vm0 = vcmask (!%p288_p2), 1043456   ;;  %vm420_vm1 = vcmask (!%p288_p2), 64512   ;;  %v333_v50 = vlaneseq (!%p288_p2) }
   0x6   : > { %291 = sbr.rel (%p288_p2) target bundleno = 1389 (0x56d), region = 56  ;;  %512 = vmatprep.mubr.f32.mxu0 (!%p288_p2), %v1727_v0  ;;  %542 = vmatprep.mubr.f32.mxu1 (!%p288_p2), %v1727_v0  ;;  %v409_v4 = vld [vmem:[%s2335_s1] sm:$0xff] (!%p288_p2)  ;;  %v414_v5 = vld [vmem:[%s2335_s1 + $0x28] sm:$0xff] (!%p288_p2)  ;;  %v415_v6 = vld [vmem:[%s2335_s1 + $0x30] sm:$0xff] (!%p288_p2)  ;;  %s1729_s18 = smov (!%p288_p2), 15   ;;  %v1734_v18 = vmov (!%p288_p2), 0  }
   0x7   : > { %591 = vrot.lane.b32.xlu1 (!%p288_p2), %v1800_v1, %s1728_s12  ;;  %v410_v7 = vld [vmem:[%s2335_s1 + $0x8] sm:$0xff] (!%p288_p2)  ;;  %v411_v8 = vld [vmem:[%s2335_s1 + $0x10] sm:$0xff] (!%p288_p2)  ;;  %v416_v9 = vld [vmem:[%s2335_s1 + $0x38] sm:$0xff] (!%p288_p2)  ;;  %s1730_s19 = smov (!%p288_p2), 16   ;;  %s1731_s20 = smov (!%p288_p2), 113   ;;  %1715 = vset.pattern.permute.xlu0 (!%p288_p2), %v1734_v18  ;;  %v334_v53 = vand.u32 (!%p288_p2), 127, %v333_v50 }
   0x8   : > { %v412_v10 = vld [vmem:[%s2335_s1 + $0x18] sm:$0xff] (!%p288_p2)  ;;  %v417_v11 = vld [vmem:[%s2335_s1 + $0x40] sm:$0xff] (!%p288_p2)  ;;  %s1732_s21 = smov (!%p288_p2), 1   ;;  %s1733_s22 = smov (!%p288_p2), 127   ;;  %1716 = vset.pattern.permute.xlu1 (!%p288_p2), %v1734_v18  ;;  %vm616_vm2 = vcmask (!%p288_p2), 130048   ;;  %vm2349_vm5 = vcmask (!%p288_p2), 138240  }
   0x9   : > { %v413_v12 = vld [vmem:[%s2335_s1 + $0x20] sm:$0xff] (!%p288_p2)  ;;  %v1880_v15 = vld [vmem:[#allocation3 + $0xd8] sm:$0xff] (!%p288_p2)  ;;  %s1735_s23 = smov (!%p288_p2), 112   ;;  %s1736_s26 = smov (!%p288_p2), 111   ;;  %v340_v56 = vand.u32 (!%p288_p2), 15, %v334_v53  ;;  %v364_v57 = vand.u32 (!%p288_p2), 255, %v334_v53 }
   0xa   : > { %v1872_v13 = vld [vmem:[#allocation3 + $0x40] sm:$0xff] (!%p288_p2)  ;;  %v1888_v17 = vld [vmem:[#allocation3 + $0xb8] sm:$0xff] (!%p288_p2)  ;;  %v335_v60 = vadd.s32 (!%p288_p2), 128, %v334_v53  ;;  %vm2348_vm6 = vcmask (!%p288_p2), 121856   ;;  %vm2345_vm11 = vcmask (!%p288_p2), 7168   ;;  %vm2344_vm13 = vcmask (!%p288_p2), 1039360  }
   0xb   : > { %v1874_v14 = vld [vmem:[#allocation3 + $0x20] sm:$0xff] (!%p288_p2)  ;;  %631 = vrot.lane.b32.xlu0 (!%p288_p2), %v1872_v13, %s1729_s18  ;;  %v1912_v38 = vld [vmem:[#allocation3 + $0xf8] sm:$0xff] (!%p288_p2)  ;;  %vm1946_vm3 = vcmp.ge.s32.totalorder (!%p288_p2), %v364_v57, 16  ;;  %vm1950_vm4 = vcmp.ge.s32.totalorder (!%p288_p2), %v340_v56, 1  ;;  %vm1963_vm8 = vcmp.le.s32.totalorder (!%p288_p2), %v340_v56, 14  ;;  %vm2346_vm15 = vcmask (!%p288_p2), 924672  }
   0xc   : > { %610 = vrot.lane.b32.xlu1 (!%p288_p2), %v1874_v14, %s1730_s19  ;;  %v1882_v16 = vld [vmem:[#allocation3 + $0x60] sm:$0xff] (!%p288_p2)  ;;  %v1918_v39 = vld [vmem:[#allocation3 + $0x118] sm:$0xff] (!%p288_p2)  ;;  %vm1959_vm7 = vmand (!%p288_p2), %vm1946_vm3, %vm1950_vm4  ;;  %v371_v50 = vand.u32 (!%p288_p2), 255, %v335_v60 }
   0xd   : > { %s2396_s10 = smov (!%p323_p3, %s1623_s10), 1  ;;  %v755_v37 = vld [vmem:[%s2336_s2] sm:$0xff]  ;;  %vm1972_vm9 = vmand %vm1946_vm3, %vm1963_vm8 }
   0xe   : > { %s1662_s11 = sshll.u32 %s2396_s10, 3  ;;  %v1106_v40 = vld [vmem:[%s2338_s4] sm:$0xff]  ;;  %vm2008_vm14 = vcmp.lt.s32.totalorder %v371_v50, 240 }
   0xf   : > { %s1810_s15 = scalar_lea.vmem %s2334_s0, %s1662_s11  ;;  %702 = vrot.lane.b32.xlu0 %v1880_v15, %s1731_s20 }
  0x10   : > { %v1813_v2 = vld [vmem:[%s1810_s15] sm:$0xff]  ;;  %652 = vrot.lane.b32.xlu1 %v1882_v16, %s1732_s21 }
  0x11   : > { %v1817_v3 = vcombine.high %v1813_v2, %v1813_v2 }
  0x13   : > { %1664 = vmatprep.subr.msk.mxu0 %vm404_vm0, %v1817_v3  ;;  %1694 = vmatprep.subr.msk.mxu1 %vm404_vm0, %v1817_v3 }
  0x14   : > { %1665 = vmatpush1.msk.msra.mxu0 %vm404_vm0, %v1813_v2  ;;  %1695 = vmatpush1.msk.msra.mxu1 %vm404_vm0, %v1813_v2 }
  0x15   : > { %1632 = vmatmul.mubr.msk.f32.vlgmr.msra.gmra.mrb[0].mxu0 %vm420_vm1, %v409_v4  ;;  %1637 = vmatmul.mubr.msk.f32.vlgmr.msra.gmra.mrb[0].mxu1 %vm420_vm1, %v414_v5  ;;  %v347_v5 = vand.u32 15, %v335_v60 }
  0x16   : > { %548 = vmatprep.mubr.f32.mxu1 %v1727_v0  ;;  %518 = vmatprep.mubr.f32.mxu0 %v1727_v0 }
  0x17   : > { %681 = vrot.lane.b32.xlu1 %v1888_v17, %s1733_s22  ;;  %vm1979_vm10 = vcmp.ge.s32.totalorder %v347_v5, 1  ;;  %vm1990_vm12 = vcmp.le.s32.totalorder %v347_v5, 14 }
  0x19   : > { %1638 = vmatmul.mubr.msk.f32.gmra.mrb[2].mxu1 %vm420_vm1, %v415_v6  ;;  %1633 = vmatmul.mubr.msk.f32.gmra.mrb[2].mxu0 %vm420_vm1, %v410_v7 }
  0x1a   : > { %524 = vmatprep.mubr.f32.mxu0 %v1727_v0  ;;  %554 = vmatprep.mubr.f32.mxu1 %v1727_v0 }
  0x1d   : > { %1634 = vmatmul.mubr.msk.f32.gmra.mrb[4].mxu0 %vm420_vm1, %v411_v8  ;;  %1639 = vmatmul.mubr.msk.f32.gmra.mrb[4].mxu1 %vm420_vm1, %v416_v9 }
  0x1e   : > { %530 = vmatprep.mubr.f32.mxu0 %v1727_v0  ;;  %560 = vmatprep.mubr.f32.mxu1 %v1727_v0 }
  0x21   : > { %1635 = vmatmul.mubr.msk.f32.gmra.mrb[6].mxu0 %vm420_vm1, %v412_v10  ;;  %1640 = vmatmul.mubr.msk.f32.gmra.mrb[6].mxu1 %vm420_vm1, %v417_v11 }
  0x22   : > { %536 = vmatprep.mubr.f32.mxu0 %v1727_v0  ;;  %871 = vmatprep.mubr.f32.mxu1 %v1727_v0 }
  0x25   : > { %1636 = vmatmul.mubr.msk.f32.gmra.mrb[8].mxu0 %vm420_vm1, %v413_v12  ;;  %vm2350_vm1 = vcmask 908288  }
  0x26   : > { %1225 = vmatprep.mubr.f32.mxu0 %v1727_v0 }
  0x79   : > { %v592_v41 = vpop.permute.xlu1 %591 }
  0x7d   : > { %v632_v43 = vpop.permute.xlu0 %631 }
  0x7e   : > { %v611_v42 = vpop.permute.xlu1 %610 }
  0x81   : > { %v1940_v45 = vpop.permute.xlu0 %702 }
  0x82   : > { %v653_v44 = vpop.permute.xlu1 %652 }
  0x89   : > { %v682_v46 = vpop.permute.xlu1 %681 }
  0xe8   : > { %v514_v19 = vpop.f32.mrb[0].mxu0  ;;  %v544_v20 = vpop.f32.mrb[0].mxu1 }
  0xe9   : > { %v516_v21 = vpop.f32.mrb[1].mxu0  ;;  %v546_v22 = vpop.f32.mrb[1].mxu1  ;;  %593 = vrot.lane.b32.xlu0 %v514_v19, %s1728_s12 }
  0xec   : > { %v550_v23 = vpop.f32.mrb[2].mxu1  ;;  %v520_v24 = vpop.f32.mrb[2].mxu0 }
  0xed   : > { %v522_v25 = vpop.f32.mrb[3].mxu0  ;;  %v552_v26 = vpop.f32.mrb[3].mxu1  ;;  %698 = vrot.lane.b32.xlu1 %v550_v23, %s1731_s20  ;;  %677 = vrot.lane.b32.xlu0 %v544_v20, %s1733_s22 }
  0xf0   : > { %v526_v27 = vpop.f32.mrb[4].mxu0  ;;  %v556_v28 = vpop.f32.mrb[4].mxu1 }
  0xf1   : > { %v528_v29 = vpop.f32.mrb[5].mxu0  ;;  %595 = vrot.lane.b32.xlu0 %v516_v21, %s1728_s12  ;;  %614 = vrot.lane.b32.xlu1 %v522_v25, %s1730_s19  ;;  %v558_v30 = vpop.f32.mrb[5].mxu1 }
  0xf4   : > { %v532_v31 = vpop.f32.mrb[6].mxu0  ;;  %v562_v32 = vpop.f32.mrb[6].mxu1 }
  0xf5   : > { %679 = vrot.lane.b32.xlu0 %v546_v22, %s1733_s22  ;;  %700 = vrot.lane.b32.xlu1 %v552_v26, %s1731_s20  ;;  %v534_v33 = vpop.f32.mrb[7].mxu0  ;;  %v564_v34 = vpop.f32.mrb[7].mxu1 }
  0xf8   : > { %v1899_v35 = vpop.f32.mrb[8].mxu0 }
  0xf9   : > { %612 = vrot.lane.b32.xlu0 %v520_v24, %s1730_s19  ;;  %635 = vrot.lane.b32.xlu1 %v528_v29, %s1729_s18  ;;  %v1903_v36 = vpop.f32.mrb[9].mxu0 }
  0xfd   : > { %633 = vrot.lane.b32.xlu0 %v526_v27, %s1729_s18  ;;  %654 = vrot.lane.b32.xlu1 %v532_v31, %s1732_s21 }
 0x101   : > { %656 = vrot.lane.b32.xlu0 %v534_v33, %s1732_s21  ;;  %721 = vrot.lane.b32.xlu1 %v558_v30, %s1735_s23 }
 0x105   : > { %758 = vperm.xlu0 %1715, %v755_v37   ;;  %723 = vrot.lane.b32.xlu1 %v1912_v38, %s1735_s23 }
 0x109   : > { %719 = vrot.lane.b32.xlu0 %v556_v28, %s1735_s23  ;;  %742 = vrot.lane.b32.xlu1 %v564_v34, %s1736_s26 }
 0x10d   : > { %744 = vrot.lane.b32.xlu0 %v1918_v39, %s1736_s26  ;;  %740 = vrot.lane.b32.xlu1 %v562_v32, %s1736_s26 }
 0x111   : > { %950 = vrot.lane.b32.xlu0 %v1800_v1, %s1728_s12  ;;  %968 = vrot.lane.b32.xlu1 %v1874_v14, %s1730_s19 }
 0x115   : > { %988 = vrot.lane.b32.xlu0 %v1872_v13, %s1729_s18  ;;  %1008 = vrot.lane.b32.xlu1 %v1882_v16, %s1732_s21 }
 0x119   : > { %1056 = vrot.lane.b32.xlu0 %v1880_v15, %s1731_s20  ;;  %1036 = vrot.lane.b32.xlu1 %v1888_v17, %s1733_s22 }
 0x11d   : > { %1109 = vperm.xlu0 %1715, %v1106_v40  }
 0x121   : > { %1076 = vrot.lane.b32.xlu0 %v1912_v38, %s1735_s23 }
 0x15b   : > { %v594_v47 = vpop.permute.xlu0 %593 }
 0x15c   : > { %v598_v9 = vsel %vm2349_vm5, %v592_v41, %v594_v47 }
 0x15d   : > { %v602_v21 = vsel %vm1959_vm7, %v598_v9, 0.0 }
 0x15f   : > { %v1942_v48 = vpop.permute.xlu1 %698  ;;  %v678_v49 = vpop.permute.xlu0 %677 }
 0x163   : > { %v596_v51 = vpop.permute.xlu0 %595  ;;  %v615_v52 = vpop.permute.xlu1 %614 }
 0x164   : > { %v599_v22 = vsel %vm2349_vm5, %v594_v47, %v596_v51 }
 0x165   : > { %v603_v29 = vsel %vm1979_vm10, %v599_v22, 0.0 }
 0x167   : > { %v680_v54 = vpop.permute.xlu0 %679  ;;  %v1944_v55 = vpop.permute.xlu1 %700 }
 0x168   : > { %v684_v51 = vsel %vm2344_vm13, %v678_v49, %v680_v54 }
 0x169   : > { %v688_v57 = vsel %vm1963_vm8, %v684_v51, 0.0 }
 0x16b   : > { %v613_v58 = vpop.permute.xlu0 %612  ;;  %v636_v59 = vpop.permute.xlu1 %635 }
 0x16c   : > { %v617_v6 = vsel %vm616_vm2, %v611_v42, %v613_v58  ;;  %v618_v25 = vsel %vm616_vm2, %v613_v58, %v615_v52 }
 0x16d   : > { %v621_v12 = vsel %vm1946_vm3, %v617_v6, 0.0  ;;  %v624_v33 = vadd.f32 %v618_v25, %v603_v29 }
 0x16e   : > { %v623_v26 = vadd.f32 %v621_v12, %v602_v21  ;;  %v1472_v21 = vld [vmem:[%s2341_s7] sm:$0xf] }
 0x16f   : > { %v634_v63 = vpop.permute.xlu0 %633  ;;  %v655_v4 = vpop.permute.xlu1 %654 }
 0x170   : > { %v638_v11 = vsel %vm2348_vm6, %v632_v43, %v634_v63  ;;  %v639_v23 = vsel %vm2348_vm6, %v634_v63, %v636_v59  ;;  %v659_v32 = vsel %vm2345_vm11, %v653_v44, %v655_v4  ;;  %v685_v44 = vsel %vm2344_vm13, %v680_v54, %v682_v46 }
 0x171   : > { %v642_v24 = vsel %vm1972_vm9, %v638_v11, 0.0  ;;  %v643_v30 = vsel %vm1990_vm12, %v639_v23, 0.0  ;;  %v663_v41 = vsel %vm1950_vm4, %v659_v32, 0.0  ;;  %v689_v59 = vsel %vm1990_vm12, %v685_v44, 0.0 }
 0x172   : > { %v644_v31 = vadd.f32 %v642_v24, %v623_v26  ;;  %v645_v40 = vadd.f32 %v643_v30, %v624_v33  ;;  %vm2347_vm13 = vcmask 916480   ;;  %v706_v54 = vsel %vm2346_vm15, %v1944_v55, %v1940_v45 }
 0x173   : > { %v722_v18 = vpop.permute.xlu1 %721  ;;  %v657_v20 = vpop.permute.xlu0 %656 }
 0x174   : > { %v660_v28 = vsel %vm2345_vm11, %v655_v4, %v657_v20  ;;  %v665_v42 = vadd.f32 %v663_v41, %v644_v31  ;;  %vm2023_vm11 = vmand %vm2008_vm14, %vm1979_vm10  ;;  %v772_v41 = vld [vmem:[%s2337_s3 + $0x28] sm:$0xff] }
 0x175   : > { %v664_v37 = vsel %vm1979_vm10, %v660_v28, 0.0  ;;  %v710_v5 = vsel %vm2023_vm11, %v706_v54, 0.0 }
 0x176   : > { %v666_v43 = vadd.f32 %v664_v37, %v645_v40  ;;  %v669_v52 = vadd.f32 %v665_v42, %v1899_v35  ;;  %v705_v35 = vsel %vm2346_vm15, %v1942_v48, %v1944_v55  ;;  %vm2045_vm15 = vmand %vm2008_vm14, %vm1990_vm12  ;;  %v770_v37 = vld [vmem:[%s2337_s3 + $0x18] sm:$0xff]  ;;  %v771_v40 = vld [vmem:[%s2337_s3 + $0x20] sm:$0xff] }
 0x177   : > { %v724_v34 = vpop.permute.xlu1 %723  ;;  %v709_v48 = vsel %vm1950_vm4, %v705_v35, 0.0  ;;  %v773_v42 = vld [vmem:[%s2337_s3 + $0x30] sm:$0xff] }
 0x178   : > { %v670_v53 = vadd.f32 %v666_v43, %v1903_v36  ;;  %v690_v36 = vadd.f32 %v688_v57, %v669_v52  ;;  %v727_v4 = vsel %vm2347_vm13, %v722_v18, %v724_v34  ;;  %v767_v34 = vld [vmem:[%s2337_s3] sm:$0xff]  ;;  %v774_v43 = vld [vmem:[%s2337_s3 + $0x38] sm:$0xff] }
 0x179   : > { %v731_v45 = vsel %vm2008_vm14, %v727_v4, 0.0 }
 0x17a   : > { %v691_v60 = vadd.f32 %v689_v59, %v670_v53  ;;  %v711_v9 = vadd.f32 %v709_v48, %v690_v36 }
 0x17b   : > { %v743_v47 = vpop.permute.xlu1 %742 }
 0x17c   : > { %v712_v11 = vadd.f32 %v710_v5, %v691_v60 }
 0x17e   : > { %v733_v24 = vadd.f32 %v731_v45, %v712_v11 }
 0x17f   : > { %v741_v58 = vpop.permute.xlu1 %740 }
 0x180   : > { %v747_v63 = vsel %vm2350_vm1, %v741_v58, %v743_v47 }
 0x181   : > { %v751_v12 = vsel %vm1963_vm8, %v747_v63, 0.0 }
 0x184   : > { %v759_v46 = vpop.permute.xlu0 %758 }
 0x188   : > { %v720_v6 = vpop.permute.xlu0 %719 }
 0x189   : > { %v726_v20 = vsel %vm2347_vm13, %v720_v6, %v722_v18  ;;  %vm1737_vm13 = vmmov 1  }
 0x18a   : > { %v732_v55 = vadd.f32 %v726_v20, %v711_v9  ;;  %vm1673_vm6 = vmpackc.low %vm1737_vm13, %vm404_vm0  ;;  %v1460_v9 = vld [vmem:[%s2340_s6] sm:$0xff]  ;;  %vm2371_vm0 = vcmask 121856  }
 0x18b   : > { %vm2373_vm13 = vmmov %vm2371_vm0 }
 0x18c   : > { %v753_v22 = vadd.f32 %v751_v12, %v732_v55  ;;  %v745_v23 = vpop.permute.xlu0 %744 }
 0x18d   : > { %v748_v25 = vsel %vm2350_vm1, %v743_v47, %v745_v23  ;;  %v775_v47 = vld [vmem:[%s2337_s3 + $0x40] sm:$0xff] }
 0x18e   : > { %v761_v26 = vadd.f32 %v759_v46, %v753_v22  ;;  %v752_v18 = vsel %vm2045_vm15, %v748_v25, 0.0 }
 0x18f   : > { %v754_v28 = vadd.f32 %v752_v18, %v733_v24 }
 0x190   : > { %v763_v30 = vmax.f32 %v761_v26, 0.0 }
 0x191   : > { %v762_v29 = vadd.f32 %v759_v46, %v754_v28 }
 0x192   : > { %v1675_v33 = vpack.c.bf16 %v763_v30, %v1813_v2  ;;  %v769_v2 = vld [vmem:[%s2337_s3 + $0x10] sm:$0xff] }
 0x193   : > { %v764_v31 = vmax.f32 %v762_v29, 0.0 }
 0x195   : > { %v1672_v32 = vpack.c.bf16 %v764_v31, %v1817_v3  ;;  %v768_v3 = vld [vmem:[%s2337_s3 + $0x8] sm:$0xff] }
 0x197   : > { %1674 = vmatprep.subr.msk.bf16.mxu1 %vm1673_vm6, %v1672_v32  ;;  %1680 = vmatprep.subr.msk.bf16.mxu0 %vm1673_vm6, %v1672_v32 }
 0x198   : > { %1677 = vmatpush1.bf16.msk.msra.mxu1 %vm1673_vm6, %v1675_v33  ;;  %1683 = vmatpush1.bf16.msk.msra.mxu0 %vm1673_vm6, %v1675_v33 }
 0x199   : > { %1686 = vmatprep.subr.msk.bf16.mxu1 %vm1673_vm6, %v1672_v32 }
 0x19b   : > { %1641 = vmatmul.mubr.msk.f32.vlgmr.msra.gmra.mrb[8].mxu1 %vm616_vm2, %v767_v34 }
 0x19c   : > { %1689 = vmatpush1.bf16.msk.msra.mxu1 %vm1673_vm6, %v1675_v33  ;;  %877 = vmatprep.mubr.f32.mxu1 %v1727_v0  ;;  %vm2372_vm6 = vcmask 7168  }
 0x19f   : > { %1642 = vmatmul.mubr.msk.f32.gmra.mrb[10].mxu1 %vm616_vm2, %v768_v3 }
 0x1a0   : > { %883 = vmatprep.mubr.f32.mxu1 %v1727_v0 }
 0x1a3   : > { %1643 = vmatmul.mubr.msk.f32.gmra.mrb[12].mxu1 %vm616_vm2, %v769_v2 }
 0x1a4   : > { %889 = vmatprep.mubr.f32.mxu1 %v1727_v0 }
 0x1a7   : > { %1644 = vmatmul.mubr.msk.f32.gmra.mrb[14].mxu1 %vm616_vm2, %v770_v37 }
 0x1a8   : > { %895 = vmatprep.mubr.f32.mxu1 %v1727_v0 }
 0x1ab   : > { %1645 = vmatmul.mubr.msk.f32.gmra.mrb[16].mxu1 %vm616_vm2, %v771_v40 }
 0x1ac   : > { %901 = vmatprep.mubr.f32.mxu1 %v1727_v0 }
 0x1af   : > { %1646 = vmatmul.mubr.msk.f32.gmra.mrb[18].mxu1 %vm616_vm2, %v772_v41 }
 0x1b0   : > { %907 = vmatprep.mubr.f32.mxu1 %v1727_v0 }
 0x1b3   : > { %1647 = vmatmul.mubr.msk.f32.gmra.mrb[20].mxu1 %vm616_vm2, %v773_v42 }
 0x1b4   : > { %913 = vmatprep.mubr.f32.mxu1 %v1727_v0 }
 0x1b7   : > { %1648 = vmatmul.mubr.msk.f32.gmra.mrb[22].mxu1 %vm616_vm2, %v774_v43 }
 0x1b8   : > { %919 = vmatprep.mubr.f32.mxu1 %v1727_v0 }
 0x1bb   : > { %1649 = vmatmul.mubr.msk.f32.gmra.mrb[24].mxu1 %vm616_vm2, %v775_v47 }
 0x1bc   : > { %1555 = vmatprep.mubr.f32.mxu1 %v1727_v0 }
 0x26e   : > { %v873_v50 = vpop.f32.mrb[8].mxu1 }
 0x26f   : > { %v875_v51 = vpop.f32.mrb[9].mxu1  ;;  %952 = vrot.lane.b32.xlu0 %v873_v50, %s1728_s12 }
 0x270   : > { %954 = vrot.lane.b32.xlu1 %v875_v51, %s1728_s12 }
 0x272   : > { %v879_v52 = vpop.f32.mrb[10].mxu1 }
 0x273   : > { %v881_v44 = vpop.f32.mrb[11].mxu1  ;;  %970 = vrot.lane.b32.xlu0 %v879_v52, %s1730_s19 }
 0x274   : > { %972 = vrot.lane.b32.xlu1 %v881_v44, %s1730_s19 }
 0x276   : > { %v885_v53 = vpop.f32.mrb[12].mxu1 }
 0x277   : > { %v887_v57 = vpop.f32.mrb[13].mxu1  ;;  %990 = vrot.lane.b32.xlu0 %v885_v53, %s1729_s18 }
 0x278   : > { %992 = vrot.lane.b32.xlu1 %v887_v57, %s1729_s18 }
 0x27a   : > { %v891_v58 = vpop.f32.mrb[14].mxu1 }
 0x27b   : > { %v893_v59 = vpop.f32.mrb[15].mxu1 }
 0x27c   : > { %1010 = vrot.lane.b32.xlu1 %v891_v58, %s1732_s21  ;;  %1012 = vrot.lane.b32.xlu0 %v893_v59, %s1732_s21 }
 0x27e   : > { %v2108_v35 = vpop.f32.mrb[16].mxu1 }
 0x27f   : > { %v2110_v46 = vpop.f32.mrb[17].mxu1 }
 0x282   : > { %v903_v36 = vpop.f32.mrb[18].mxu1 }
 0x283   : > { %v905_v54 = vpop.f32.mrb[19].mxu1  ;;  %1032 = vrot.lane.b32.xlu0 %v903_v36, %s1733_s22 }
 0x286   : > { %v909_v60 = vpop.f32.mrb[20].mxu1 }
 0x287   : > { %v911_v63 = vpop.f32.mrb[21].mxu1  ;;  %1034 = vrot.lane.b32.xlu0 %v905_v54, %s1733_s22  ;;  %1052 = vrot.lane.b32.xlu1 %v909_v60, %s1731_s20 }
 0x28a   : > { %v915_v48 = vpop.f32.mrb[22].mxu1 }
 0x28b   : > { %v917_v4 = vpop.f32.mrb[23].mxu1  ;;  %1054 = vrot.lane.b32.xlu1 %v911_v63, %s1731_s20 }
 0x28e   : > { %v921_v5 = vpop.f32.mrb[24].mxu1 }
 0x28f   : > { %v923_v6 = vpop.f32.mrb[25].mxu1  ;;  %1072 = vrot.lane.b32.xlu1 %v915_v48, %s1735_s23 }
 0x290   : > { %1094 = vrot.lane.b32.xlu0 %v923_v6, %s1736_s26 }
 0x293   : > { %1074 = vrot.lane.b32.xlu1 %v917_v4, %s1735_s23 }
 0x294   : > { %1092 = vrot.lane.b32.xlu0 %v921_v5, %s1736_s26 }
 0x297   : > { %1096 = vrot.lane.b32.xlu1 %v1918_v39, %s1736_s26 }
 0x298   : > { %1322 = vrot.lane.b32.xlu0 %v1874_v14, %s1730_s19 }
 0x29b   : > { %1304 = vrot.lane.b32.xlu1 %v1800_v1, %s1728_s12  ;;  %v951_v1 = vpop.permute.xlu0 %950 }
 0x29c   : > { %1362 = vrot.lane.b32.xlu0 %v1882_v16, %s1732_s21  ;;  %v969_v16 = vpop.permute.xlu1 %968 }
 0x29f   : > { %1342 = vrot.lane.b32.xlu1 %v1872_v13, %s1729_s18  ;;  %v989_v14 = vpop.permute.xlu0 %988 }
 0x2a0   : > { %1390 = vrot.lane.b32.xlu0 %v1888_v17, %s1733_s22  ;;  %v1009_v12 = vpop.permute.xlu1 %1008 }
 0x2a3   : > { %1410 = vrot.lane.b32.xlu1 %v1880_v15, %s1731_s20  ;;  %v1057_v11 = vpop.permute.xlu0 %1056 }
 0x2a4   : > { %v1037_v17 = vpop.permute.xlu1 %1036 }
 0x2a7   : > { %1463 = vperm.xlu1 %1716, %v1460_v9   ;;  %v2139_v13 = vpop.permute.xlu0 %1109 }
 0x2ab   : > { %1430 = vrot.lane.b32.xlu1 %v1912_v38, %s1735_s23  ;;  %v1077_v20 = vpop.permute.xlu0 %1076 }
 0x2e1   : > { %v953_v45 = vpop.permute.xlu0 %952 }
 0x2e2   : > { %v955_v55 = vpop.permute.xlu1 %954  ;;  %v956_v38 = vsel %vm2349_vm5, %v951_v1, %v953_v45 }
 0x2e3   : > { %v960_v32 = vsel %vm1959_vm7, %v956_v38, 0.0  ;;  %v957_v33 = vsel %vm2349_vm5, %v953_v45, %v955_v55 }
 0x2e4   : > { %v961_v47 = vsel %vm1979_vm10, %v957_v33, 0.0 }
 0x2e5   : > { %v971_v15 = vpop.permute.xlu0 %970 }
 0x2e6   : > { %v973_v22 = vpop.permute.xlu1 %972  ;;  %v974_v26 = vsel %vm616_vm2, %v969_v16, %v971_v15 }
 0x2e7   : > { %v978_v30 = vsel %vm1946_vm3, %v974_v26, 0.0  ;;  %v975_v37 = vsel %vm616_vm2, %v971_v15, %v973_v22 }
 0x2e8   : > { %v980_v2 = vadd.f32 %v978_v30, %v960_v32  ;;  %v981_v52 = vadd.f32 %v975_v37, %v961_v47  ;;  %v1122_v37 = vld [vmem:[%s2339_s5 + $0x20] sm:$0xff] }
 0x2e9   : > { %v991_v23 = vpop.permute.xlu0 %990 }
 0x2ea   : > { %v993_v24 = vpop.permute.xlu1 %992  ;;  %v994_v28 = vsel %vm2371_vm0, %v989_v14, %v991_v23  ;;  %vm2374_vm0 = vmmov %vm2372_vm6 }
 0x2eb   : > { %v998_v34 = vsel %vm1972_vm9, %v994_v28, 0.0  ;;  %v995_v3 = vsel %vm2373_vm13, %v991_v23, %v993_v24  ;;  %vm2376_vm13 = vcmask 924672  }
 0x2ec   : > { %v1000_v50 = vadd.f32 %v998_v34, %v980_v2  ;;  %v999_v51 = vsel %vm1990_vm12, %v995_v3, 0.0  ;;  %vm2378_vm5 = vmmov %vm2376_vm13  ;;  %v1118_v34 = vld [vmem:[%s2339_s5] sm:$0xff]  ;;  %v1120_v3 = vld [vmem:[%s2339_s5 + $0x10] sm:$0xff] }
 0x2ed   : > { %v1001_v59 = vadd.f32 %v999_v51, %v981_v52  ;;  %v1121_v2 = vld [vmem:[%s2339_s5 + $0x18] sm:$0xff] }
 0x2ee   : > { %v1013_v25 = vpop.permute.xlu0 %1012  ;;  %v1011_v18 = vpop.permute.xlu1 %1010 }
 0x2ef   : > { %v1014_v31 = vsel %vm2372_vm6, %v1009_v12, %v1011_v18  ;;  %v1015_v42 = vsel %vm2374_vm0, %v1011_v18, %v1013_v25  ;;  %vm2375_vm6 = vcmask 1039360  }
 0x2f0   : > { %v1018_v41 = vsel %vm1950_vm4, %v1014_v31, 0.0  ;;  %v1019_v53 = vsel %vm1979_vm10, %v1015_v42, 0.0  ;;  %vm2377_vm0 = vmmov %vm2375_vm6  ;;  %v1125_v42 = vld [vmem:[%s2339_s5 + $0x38] sm:$0xff] }
 0x2f1   : > { %v1020_v44 = vadd.f32 %v1018_v41, %v1000_v50  ;;  %v1021_v54 = vadd.f32 %v1019_v53, %v1001_v59  ;;  %v1124_v41 = vld [vmem:[%s2339_s5 + $0x30] sm:$0xff] }
 0x2f3   : > { %v1024_v48 = vadd.f32 %v1020_v44, %v2108_v35  ;;  %v1025_v16 = vadd.f32 %v1021_v54, %v2110_v46 }
 0x2f5   : > { %v1033_v29 = vpop.permute.xlu0 %1032 }
 0x2f9   : > { %v1053_v40 = vpop.permute.xlu1 %1052  ;;  %v1035_v43 = vpop.permute.xlu0 %1034 }
 0x2fa   : > { %v1038_v57 = vsel %vm2375_vm6, %v1033_v29, %v1035_v43  ;;  %v1039_v60 = vsel %vm2377_vm0, %v1035_v43, %v1037_v17  ;;  %vm2379_vm6 = vcmask 916480   ;;  %v1126_v43 = vld [vmem:[%s2339_s5 + $0x40] sm:$0xff]  ;;  %vm2381_vm0 = vcmask 138240  }
 0x2fb   : > { %v1042_v63 = vsel %vm1963_vm8, %v1038_v57, 0.0  ;;  %v1043_v1 = vsel %vm1990_vm12, %v1039_v60, 0.0 }
 0x2fc   : > { %v1044_v14 = vadd.f32 %v1042_v63, %v1024_v48  ;;  %v1045_v55 = vadd.f32 %v1043_v1, %v1025_v16 }
 0x2fd   : > { %v1055_v58 = vpop.permute.xlu1 %1054 }
 0x2fe   : > { %v1058_v36 = vsel %vm2376_vm13, %v1053_v40, %v1055_v58  ;;  %v1059_v5 = vsel %vm2378_vm5, %v1055_v58, %v1057_v11  ;;  %vm2380_vm13 = vmmov %vm2379_vm6  ;;  %vm1133_vm5 = vcmask 195584   ;;  %v1123_v40 = vld [vmem:[%s2339_s5 + $0x28] sm:$0xff] }
 0x2ff   : > { %v1062_v6 = vsel %vm1950_vm4, %v1058_v36, 0.0  ;;  %v1063_v12 = vsel %vm2023_vm11, %v1059_v5, 0.0 }
 0x300   : > { %v1064_v17 = vadd.f32 %v1062_v6, %v1044_v14  ;;  %v1065_v25 = vadd.f32 %v1063_v12, %v1045_v55 }
 0x301   : > { %v1073_v4 = vpop.permute.xlu1 %1072 }
 0x302   : > { %v1095_v9 = vpop.permute.xlu0 %1094 }
 0x305   : > { %v1075_v45 = vpop.permute.xlu1 %1074 }
 0x306   : > { %v1078_v35 = vsel %vm2379_vm6, %v1073_v4, %v1075_v45  ;;  %v1079_v11 = vsel %vm2380_vm13, %v1075_v45, %v1077_v20  ;;  %v1093_v15 = vpop.permute.xlu0 %1092  ;;  %vm2382_vm6 = vcmask 121856   ;;  %vm2383_vm13 = vcmask 7168  }
 0x307   : > { %v1083_v22 = vsel %vm2008_vm14, %v1079_v11, 0.0  ;;  %v1084_v23 = vadd.f32 %v1078_v35, %v1064_v17  ;;  %v1098_v24 = vsel %vm2350_vm1, %v1093_v15, %v1095_v9 }
 0x308   : > { %v1102_v46 = vsel %vm1963_vm8, %v1098_v24, 0.0  ;;  %v1085_v38 = vadd.f32 %v1083_v22, %v1065_v25 }
 0x309   : > { %v1104_v26 = vadd.f32 %v1102_v46, %v1084_v23  ;;  %v1097_v18 = vpop.permute.xlu1 %1096 }
 0x30a   : > { %v1099_v28 = vsel %vm2350_vm1, %v1095_v9, %v1097_v18  ;;  %v1481_v9 = vld [vmem:[%s2342_s8] sm:$0xf]  ;;  %v1323_v12 = vpop.permute.xlu0 %1322  ;;  %vm2385_vm1 = vmmov %vm2382_vm6 }
 0x30b   : > { %v1103_v29 = vsel %vm2045_vm15, %v1099_v28, 0.0  ;;  %v2188_v30 = vadd.f32 %v2139_v13, %v1104_v26 }
 0x30c   : > { %v1105_v20 = vadd.f32 %v1103_v29, %v1085_v38 }
 0x30d   : > { %v1114_v33 = vmax.f32 %v2188_v30, 0.0  ;;  %v1305_v1 = vpop.permute.xlu1 %1304  ;;  %v1718_v30 = vld [vmem:[%s1810_s15] sm:$0xff] }
 0x30e   : > { %v2191_v31 = vadd.f32 %v2139_v13, %v1105_v20  ;;  %v1119_v13 = vld [vmem:[%s2339_s5 + $0x8] sm:$0xff]  ;;  %v1363_v45 = vpop.permute.xlu0 %1362 }
 0x310   : > { %v1115_v32 = vmax.f32 %v2191_v31, 0.0 }
 0x311   : > { %v1343_v14 = vpop.permute.xlu1 %1342 }
 0x312   : > { %1165 = vmatprep.subr.mxu0 %v1115_v32  ;;  %v1391_v35 = vpop.permute.xlu0 %1390 }
 0x313   : > { %1166 = vmatpush1.msra.mxu0 %v1114_v33 }
 0x314   : > { %1650 = vmatmul.mubr.msk.f32.vlgmr.msra.gmra.mrb[10].mxu0 %vm1133_vm5, %v1118_v34 }
 0x315   : > { %1231 = vmatprep.mubr.f32.mxu0 %v1727_v0  ;;  %v1411_v16 = vpop.permute.xlu1 %1410 }
 0x318   : > { %1651 = vmatmul.mubr.msk.f32.gmra.mrb[12].mxu0 %vm1133_vm5, %v1119_v13 }
 0x319   : > { %1237 = vmatprep.mubr.f32.mxu0 %v1727_v0 }
 0x31c   : > { %1652 = vmatmul.mubr.msk.f32.gmra.mrb[14].mxu0 %vm1133_vm5, %v1120_v3 }
 0x31d   : > { %1243 = vmatprep.mubr.f32.mxu0 %v1727_v0 }
 0x320   : > { %1653 = vmatmul.mubr.msk.f32.gmra.mrb[16].mxu0 %vm1133_vm5, %v1121_v2 }
 0x321   : > { %1249 = vmatprep.mubr.f32.mxu0 %v1727_v0 }
 0x324   : > { %1654 = vmatmul.mubr.msk.f32.gmra.mrb[18].mxu0 %vm1133_vm5, %v1122_v37 }
 0x325   : > { %1255 = vmatprep.mubr.f32.mxu0 %v1727_v0 }
 0x326   : > { %v2268_v17 = vpop.permute.xlu1 %1463 }
 0x328   : > { %1655 = vmatmul.mubr.msk.f32.gmra.mrb[20].mxu0 %vm1133_vm5, %v1123_v40 }
 0x329   : > { %1261 = vmatprep.mubr.f32.mxu0 %v1727_v0 }
 0x32a   : > { %v1431_v55 = vpop.permute.xlu1 %1430 }
 0x32c   : > { %1656 = vmatmul.mubr.msk.f32.gmra.mrb[22].mxu0 %vm1133_vm5, %v1124_v41 }
 0x32d   : > { %1267 = vmatprep.mubr.f32.mxu0 %v1727_v0 }
 0x330   : > { %1657 = vmatmul.mubr.msk.f32.gmra.mrb[24].mxu0 %vm1133_vm5, %v1125_v42 }
 0x331   : > { %1273 = vmatprep.mubr.f32.mxu0 %v1727_v0 }
 0x334   : > { %1658 = vmatmul.mubr.msk.f32.gmra.mrb[26].mxu0 %vm1133_vm5, %v1126_v43  ;;  %vm2384_vm5 = vmmov %vm2381_vm0 }
 0x3e7   : > { %v1227_v47 = vpop.f32.mrb[10].mxu0 }
 0x3e8   : > { %v1229_v50 = vpop.f32.mrb[11].mxu0  ;;  %1306 = vrot.lane.b32.xlu1 %v1227_v47, %s1728_s12 }
 0x3e9   : > { %1308 = vrot.lane.b32.xlu0 %v1229_v50, %s1728_s12 }
 0x3eb   : > { %v1233_v51 = vpop.f32.mrb[12].mxu0 }
 0x3ec   : > { %v1235_v52 = vpop.f32.mrb[13].mxu0  ;;  %1324 = vrot.lane.b32.xlu1 %v1233_v51, %s1730_s19 }
 0x3ed   : > { %1326 = vrot.lane.b32.xlu0 %v1235_v52, %s1730_s19 }
 0x3ef   : > { %v1239_v44 = vpop.f32.mrb[14].mxu0 }
 0x3f0   : > { %v1241_v0 = vpop.f32.mrb[15].mxu0  ;;  %1344 = vrot.lane.b32.xlu1 %v1239_v44, %s1729_s18 }
 0x3f1   : > { %1346 = vrot.lane.b32.xlu0 %v1241_v0, %s1729_s18 }
 0x3f3   : > { %v1245_v53 = vpop.f32.mrb[16].mxu0 }
 0x3f4   : > { %v1247_v57 = vpop.f32.mrb[17].mxu0 }
 0x3f5   : > { %1364 = vrot.lane.b32.xlu0 %v1245_v53, %s1732_s21  ;;  %1366 = vrot.lane.b32.xlu1 %v1247_v57, %s1732_s21 }
 0x3f7   : > { %v2251_v58 = vpop.f32.mrb[18].mxu0 }
 0x3f8   : > { %v2253_v59 = vpop.f32.mrb[19].mxu0 }
 0x3fb   : > { %v1257_v36 = vpop.f32.mrb[20].mxu0 }
 0x3fc   : > { %v1259_v54 = vpop.f32.mrb[21].mxu0  ;;  %1386 = vrot.lane.b32.xlu1 %v1257_v36, %s1733_s22 }
 0x3ff   : > { %v1263_v60 = vpop.f32.mrb[22].mxu0 }
 0x400   : > { %v1265_v63 = vpop.f32.mrb[23].mxu0  ;;  %1388 = vrot.lane.b32.xlu1 %v1259_v54, %s1733_s22  ;;  %1406 = vrot.lane.b32.xlu0 %v1263_v60, %s1731_s20 }
 0x403   : > { %v1269_v48 = vpop.f32.mrb[24].mxu0 }
 0x404   : > { %v1271_v4 = vpop.f32.mrb[25].mxu0  ;;  %1408 = vrot.lane.b32.xlu0 %v1265_v63, %s1731_s20 }
 0x407   : > { %v1275_v5 = vpop.f32.mrb[26].mxu0 }
 0x408   : > { %v1277_v6 = vpop.f32.mrb[27].mxu0  ;;  %1426 = vrot.lane.b32.xlu0 %v1269_v48, %s1735_s23 }
 0x409   : > { %1448 = vrot.lane.b32.xlu1 %v1277_v6, %s1736_s26 }
 0x40c   : > { %1428 = vrot.lane.b32.xlu0 %v1271_v4, %s1735_s23  ;;  %s332_s23 = scalar_lea.vmem %s2343_s9, %s1662_s11 }
 0x40d   : > { %1446 = vrot.lane.b32.xlu1 %v1275_v5, %s1736_s26 }
 0x410   : > { %1450 = vrot.lane.b32.xlu0 %v1918_v39, %s1736_s26 }
 0x414   : > { %1484 = vperm.xlu0 %1715, %v1481_v9  }
 0x45a   : > { %v1307_v11 = vpop.permute.xlu1 %1306 }
 0x45b   : > { %v1309_v15 = vpop.permute.xlu0 %1308  ;;  %v1310_v18 = vsel %vm2381_vm0, %v1305_v1, %v1307_v11  ;;  %vm2386_vm0 = vmmov %vm2383_vm13 }
 0x45c   : > { %v1314_v34 = vsel %vm1959_vm7, %v1310_v18, 0.0  ;;  %v1311_v13 = vsel %vm2384_vm5, %v1307_v11, %v1309_v15 }
 0x45d   : > { %v1315_v7 = vsel %vm1979_vm10, %v1311_v13, 0.0 }
 0x45e   : > { %v1325_v22 = vpop.permute.xlu1 %1324 }
 0x45f   : > { %v1327_v23 = vpop.permute.xlu0 %1326  ;;  %v1328_v46 = vsel %vm616_vm2, %v1323_v12, %v1325_v22 }
 0x460   : > { %v1332_v29 = vsel %vm1946_vm3, %v1328_v46, 0.0  ;;  %v1329_v40 = vsel %vm616_vm2, %v1325_v22, %v1327_v23  ;;  %vm2387_vm2 = vcmask 1039360   ;;  %vm2388_vm3 = vcmask 924672  }
 0x461   : > { %v1334_v37 = vadd.f32 %v1332_v29, %v1314_v34  ;;  %v1335_v50 = vadd.f32 %v1329_v40, %v1315_v7  ;;  %vm2389_vm7 = vmmov %vm2387_vm2 }
 0x462   : > { %v1345_v24 = vpop.permute.xlu1 %1344 }
 0x463   : > { %v1347_v39 = vpop.permute.xlu0 %1346  ;;  %v1348_v38 = vsel %vm2382_vm6, %v1343_v14, %v1345_v24 }
 0x464   : > { %v1352_v3 = vsel %vm1972_vm9, %v1348_v38, 0.0  ;;  %v1349_v2 = vsel %vm2385_vm1, %v1345_v24, %v1347_v39  ;;  %vm2390_vm9 = vmmov %vm2388_vm3 }
 0x465   : > { %v1354_v47 = vadd.f32 %v1352_v3, %v1334_v37  ;;  %v1353_v10 = vsel %vm1990_vm12, %v1349_v2, 0.0 }
 0x466   : > { %v1355_v53 = vadd.f32 %v1353_v10, %v1335_v50 }
 0x467   : > { %v1367_v25 = vpop.permute.xlu1 %1366  ;;  %v1365_v26 = vpop.permute.xlu0 %1364 }
 0x468   : > { %v1368_v20 = vsel %vm2383_vm13, %v1363_v45, %v1365_v26  ;;  %v1369_v42 = vsel %vm2386_vm0, %v1365_v26, %v1367_v25 }
 0x469   : > { %v1372_v61 = vsel %vm1950_vm4, %v1368_v20, 0.0  ;;  %v1373_v51 = vsel %vm1979_vm10, %v1369_v42, 0.0  ;;  %vm2391_vm10 = vcmask 916480  }
 0x46a   : > { %v1374_v52 = vadd.f32 %v1372_v61, %v1354_v47  ;;  %v1375_v36 = vadd.f32 %v1373_v51, %v1355_v53  ;;  %vm2392_vm1 = vmmov %vm2391_vm10 }
 0x46c   : > { %v1378_v63 = vadd.f32 %v1374_v52, %v2251_v58  ;;  %v1379_v1 = vadd.f32 %v1375_v36, %v2253_v59 }
 0x46e   : > { %v1387_v28 = vpop.permute.xlu1 %1386 }
 0x472   : > { %v1407_v41 = vpop.permute.xlu0 %1406  ;;  %v1389_v43 = vpop.permute.xlu1 %1388 }
 0x473   : > { %v1392_v44 = vsel %vm2387_vm2, %v1387_v28, %v1389_v43  ;;  %v1393_v54 = vsel %vm2389_vm7, %v1389_v43, %v1391_v35 }
 0x474   : > { %v1396_v60 = vsel %vm1963_vm8, %v1392_v44, 0.0  ;;  %v1397_v6 = vsel %vm1990_vm12, %v1393_v54, 0.0 }
 0x475   : > { %v1398_v9 = vadd.f32 %v1396_v60, %v1378_v63  ;;  %v1399_v35 = vadd.f32 %v1397_v6, %v1379_v1 }
 0x476   : > { %v1409_v0 = vpop.permute.xlu0 %1408 }
 0x477   : > { %v1412_v57 = vsel %vm2388_vm3, %v1407_v41, %v1409_v0  ;;  %v1413_v4 = vsel %vm2390_vm9, %v1409_v0, %v1411_v16 }
 0x478   : > { %v1416_v19 = vsel %vm1950_vm4, %v1412_v57, 0.0  ;;  %v1417_v14 = vsel %vm2023_vm11, %v1413_v4, 0.0  ;;  %vm2393_vm4 = vcmask 908288  }
 0x479   : > { %v1418_v12 = vadd.f32 %v1416_v19, %v1398_v9  ;;  %v1419_v22 = vadd.f32 %v1417_v14, %v1399_v35  ;;  %vm2394_vm11 = vmmov %vm2393_vm4 }
 0x47a   : > { %v1427_v48 = vpop.permute.xlu0 %1426 }
 0x47b   : > { %v1449_v5 = vpop.permute.xlu1 %1448 }
 0x47e   : > { %v1429_v45 = vpop.permute.xlu0 %1428 }
 0x47f   : > { %v1432_v58 = vsel %vm2391_vm10, %v1427_v48, %v1429_v45  ;;  %v1433_v16 = vsel %vm2392_vm1, %v1429_v45, %v1431_v55  ;;  %v1447_v11 = vpop.permute.xlu1 %1446 }
 0x480   : > { %v1437_v62 = vsel %vm2008_vm14, %v1433_v16, 0.0  ;;  %v1438_v15 = vadd.f32 %v1432_v58, %v1418_v12  ;;  %v1452_v27 = vsel %vm2393_vm4, %v1447_v11, %v1449_v5 }
 0x481   : > { %v1456_v59 = vsel %vm1963_vm8, %v1452_v27, 0.0  ;;  %v1439_v24 = vadd.f32 %v1437_v62, %v1419_v22  ;;  %vm1487_vm8 = vcmask 261120  }
 0x482   : > { %v1458_v49 = vadd.f32 %v1456_v59, %v1438_v15  ;;  %v1451_v23 = vpop.permute.xlu0 %1450 }
 0x483   : > { %v1453_v39 = vsel %vm2394_vm11, %v1449_v5, %v1451_v23 }
 0x484   : > { %v1466_v25 = vadd.f32 %v2268_v17, %v1458_v49  ;;  %v1457_v55 = vsel %vm2045_vm15, %v1453_v39, 0.0 }
 0x485   : > { %v1459_v46 = vadd.f32 %v1457_v55, %v1439_v24 }
 0x486   : > { %v1468_v26 = vmax.f32 %v1466_v25, 0.0 }
 0x487   : > { %v1467_v56 = vadd.f32 %v2268_v17, %v1459_v46 }
 0x488   : > { %v1692_v38 = vpack.c.bf16 %v1468_v26, %v1114_v33 }
 0x489   : > { %v1469_v18 = vmax.f32 %v1467_v56, 0.0 }
 0x48b   : > { %v1690_v8 = vpack.c.bf16 %v1469_v18, %v1115_v32 }
 0x48d   : > { %1691 = vmatprep.subr.bf16.mxu1 %v1690_v8 }
 0x48e   : > { %1693 = vmatpush1.bf16.msra.mxu1 %v1692_v38 }
 0x491   : > { %1659 = vmatmul.mubr.msk.f32.vlgmr.msra.gmra.mrb[26].mxu1 %vm1487_vm8, %v1472_v21 }
 0x493   : > { %v1485_v28 = vpop.permute.xlu0 %1484 }
 0x564   : > { %v1557_v17 = vpop.f32.mrb[26].mxu1 }
 0x565   : > { %v1558_v29 = vadd.f32 %v1557_v17, %v1485_v28  ;;  %v1559_v20 = vpop.f32.mrb[27].mxu1 }
 0x566   : > { %v1560_v34 = vadd.f32 %v1559_v20, %v1485_v28 }
 0x568   : > { %v1564_v13 = vcombine.low %v1558_v29, %v1560_v34 }
 0x56a   : > { %v1566_v31 = vadd.f32 %v1718_v30, %v1564_v13 }
 0x56c   : > { %1567 = vst [vmem:[%s332_s23] sm:$0xff] %v1566_v31 }
 0x56d PF: > { %s19_s30 = sadd.s32 1, %s1725_s30  }
 0x56e   : > { %p16_p4 = scmp.ge.s32.totalorder %s19_s30, 4  }
 0x570   :  { %18 = sbr.rel (!%p16_p4) target bundleno = 1 (0x1), region = 86 }

</bundles_post_ra>
